<compile_context>
chip_gen: v7x
topology: tpu7x:2x2x1
jax: 0.10.0
libtpu: 0.0.40
codegen_flags: <defaults>
</compile_context>

<pallas_src>
import jax
import jax.numpy as jnp
from jax.experimental import pallas as pl
from jax.experimental.pallas import tpu as pltpu

_H1, _H2 = 256, 128  # hidden widths from the PyTorch module


def _disc_kernel(x_ref, w1_ref, w2_ref, p_ref, o_ref):
    """One batch tile: Linear -> LeakyReLU -> Linear -> LeakyReLU -> Linear -> Sigmoid."""
    # MXU is bf16-native; accumulate in f32.  If x already arrives in bf16 the
    # astype is a no-op (no extra VMEM copy / VPU pack).
    x = x_ref[...].astype(jnp.bfloat16)

    # Small parameters packed into one f32 row: [b1 | b2 | w3_row | b3].
    # All slice starts are 128-lane aligned except the final 1-wide b3 read.
    b1 = p_ref[:, 0:_H1]                              # (1, 256)
    b2 = p_ref[:, _H1:_H1 + _H2]                      # (1, 128)
    w3 = p_ref[:, _H1 + _H2:_H1 + 2 * _H2]            # (1, 128)
    b3 = p_ref[:, _H1 + 2 * _H2:_H1 + 2 * _H2 + 1]    # (1, 1)

    # Layer 1: Linear(F, 256) + LeakyReLU(0.01).  bf16 operands, f32 accumulate.
    h1 = jnp.dot(x, w1_ref[...], preferred_element_type=jnp.float32) + b1
    h1 = jnp.where(h1 > 0, h1, 0.01 * h1)             # keep f32 elementwise (v5e-safe)

    # Layer 2: Linear(256, 128) + LeakyReLU(0.01).
    h2 = jnp.dot(h1.astype(jnp.bfloat16), w2_ref[...],
                 preferred_element_type=jnp.float32) + b2
    h2 = jnp.where(h2 > 0, h2, 0.01 * h2)

    # Layer 3: Linear(128, 1).  N=1 matvec -> VPU multiply + XLU lane-reduce
    # instead of a 1/128-occupancy MXU pass.
    logit = jnp.sum(h2 * w3, axis=-1, keepdims=True) + b3

    # Sigmoid on the tiny (TB, 1) result.  Exact reciprocal so the output can
    # never exceed 1.0 (approx=True has ~2^-12 rel. error and could).
    o_ref[...] = pl.reciprocal(1.0 + jnp.exp(-logit), approx=False)


def _round_up(x, m):
    return ((x + m - 1) // m) * m


def _num_tensorcores():
    """2 for megacore-style parts (v7x / v4 / v5p), else 1 (v5e / v6e)."""
    try:
        kind = jax.devices()[0].device_kind.lower()
    except Exception:
        return 1
    for tag in ("v7", "7x", "v4", "v5p"):
        if tag in kind:
            return 2
    return 1


def _pick_batch_tile(B, F, x_itemsize, n_cores, budget_bytes):
    """Pick (TB, padded_B).

    The kernel is HBM-bound on the x stream, so TB should be as large as VMEM
    allows (per-grid-step overhead ~0.35us must be amortized over each tile's
    DMA).  Budget per batch row:
      * 2 pipelined buffers of the (TB, F) x tile,
      * a transient bf16 copy of the tile if x arrives wider than bf16,
      * f32 activations h1 (256) / h2 (128) and the output.
    Weights are reserved double-buffered so the budget still holds if
    pl.Buffered(1) is unavailable on this jax version.
    """
    bf16_copy = 0 if x_itemsize <= 2 else F * 2
    per_row = 2 * F * x_itemsize + bf16_copy + (_H1 + _H2 + 2) * 4
    weights = 2 * (F * _H1 * 2 + _H1 * _H2 * 2 + 8 * 640 * 4)
    avail = max(budget_bytes - weights, 1 << 20)
    tb_cap = max(int(avail // per_row), 8)
    tb_cap = min(tb_cap, 1024)  # past ~1024 rows the tile DMA is ~roofline already

    if B <= tb_cap:
        if n_cores >= 2 and B >= 16:
            # >=2 grid steps so ("parallel",) can shard the batch across both
            # TensorCores (v7x); pointless (and wasteful) for tiny batches.
            TB = _round_up(pl.cdiv(B, 2), 8)
        else:
            TB = B  # single full-batch tile (block == full dim is always legal)
    else:
        TB = max(8, (tb_cap // 8) * 8)
    Bp = _round_up(B, TB)
    return TB, Bp


def discriminator_forward(x, kernel_params, *, vmem_budget_bytes=24 * 1024 * 1024):
    """Discriminator forward pass.

    x:             [B, ...]; flattened to [B, F] (== torch.flatten(start_dim=1)).
                   Streamed in its native dtype (bf16 halves the dominant HBM read).
    kernel_params: (w1 [F,256] bf16, w2 [256,128] bf16, packed [1,513] f32)
                   as produced by pack_params().
    Returns        [B, 1] float32 probabilities in (0, 1].
    """
    w1, w2, packed = kernel_params
    B = x.shape[0]
    x_flat = x.reshape(B, -1)  # no forced f32 round-trip
    F = x_flat.shape[1]
    if w1.shape != (F, _H1):
        raise ValueError(f"w1 shape {w1.shape} does not match in_features {F}")

    TB, Bp = _pick_batch_tile(B, F, x_flat.dtype.itemsize,
                              _num_tensorcores(), vmem_budget_bytes)
    if Bp != B:
        x_flat = jnp.pad(x_flat, ((0, Bp - B), (0, 0)))

    def build(single_buffer_weights):
        if single_buffer_weights:
            # Constant index_map -> fetched once; a second pipeline buffer only
            # wastes VMEM that could go to a bigger batch tile (w1 especially).
            const = lambda a: pl.BlockSpec(a.shape, lambda i: (0,) * a.ndim,
                                           pipeline_mode=pl.Buffered(1))
        else:
            const = lambda a: pl.BlockSpec(a.shape, lambda i: (0,) * a.ndim)
        return pl.pallas_call(
            _disc_kernel,
            out_shape=jax.ShapeDtypeStruct((Bp, 1), jnp.float32),
            grid=(Bp // TB,),
            in_specs=[
                # TODO(synk): on v7x, sweep pipeline_mode=pl.Buffered(3) here if
                # the trace shows exposed x-tile DMA (short tiles at ~3.2 TB/s).
                pl.BlockSpec((TB, F), lambda i: (i, 0)),
                const(w1), const(w2), const(packed),
            ],
            out_specs=pl.BlockSpec((TB, 1), lambda i: (i, 0)),
            compiler_params=pltpu.CompilerParams(
                # Batch axis is embarrassingly parallel -> megacore sharding on
                # 2-TC parts.  Explicit VMEM limit so the TB budget also holds
                # on v5e (16 MiB scoped default) and inside v7x's 64 MiB VMEM.
                dimension_semantics=("parallel",),
                vmem_limit_bytes=32 * 1024 * 1024,
            ),
        )

    out = None
    last_err = None
    for single_buf in (True, False):
        try:
            out = build(single_buf)(x_flat, w1, w2, packed)
            break
        except Exception as err:  # pl.Buffered(1) unsupported -> default buffering
            last_err = err
            out = None
    if out is None:
        raise last_err
    return out[:B]


def init_params(key, in_features, dtype=jnp.float32):
    """nn.Linear-style init: U(-1/sqrt(fan_in), +1/sqrt(fan_in)).

    Weight layout is [in, out] (transpose of torch's [out, in]) so the kernel
    computes x @ W + b (== torch's x @ W.T + b); w3 keeps torch's (1, 128) row.
    """
    def uniform(k, shape, fan_in):
        bound = 1.0 / float(fan_in) ** 0.5
        return jax.random.uniform(k, shape, dtype, -bound, bound)

    k = jax.random.split(key, 6)
    w1 = uniform(k[0], (in_features, _H1), in_features)
    b1 = uniform(k[1], (1, _H1), in_features)
    w2 = uniform(k[2], (_H1, _H2), _H1)
    b2 = uniform(k[3], (1, _H2), _H1)
    w3 = uniform(k[4], (1, _H2), _H2)
    b3 = uniform(k[5], (1, 1), _H2)
    return (w1, b1, w2, b2, w3, b3)


def pack_params(params):
    """Kernel-layout parameters.

    Explicit accuracy decision: w1/w2 are stored in bf16 (halves the per-call
    weight fetch; MXU is bf16-native) with f32 accumulation in the kernel --
    expect <~1e-2 relative deviation from a pure-f32 nn.Linear.  The four tiny
    parameters (b1, b2, w3-row, b3) are packed into a single [1, 513] f32 row
    so the kernel issues one small DMA instead of four padded ones.
    """
    w1, b1, w2, b2, w3, b3 = params
    packed = jnp.concatenate(
        [b1.reshape(1, -1), b2.reshape(1, -1), w3.reshape(1, -1),
         b3.reshape(1, 1)], axis=1).astype(jnp.float32)  # (1, 513)
    return (w1.astype(jnp.bfloat16), w2.astype(jnp.bfloat16), packed)


if __name__ == "__main__":
    key = jax.random.PRNGKey(0)
    k_x, k_p = jax.random.split(key)

    # Small NCHW input: batch=2, channels=4, spatial 16x16 -> in_features=1024.
    B, C, H, W = 2, 4, 16, 16
    in_features = C * H * W
    x = jax.random.normal(k_x, (B, C, H, W), jnp.float32)

    params = init_params(k_p, in_features)
    kparams = pack_params(params)

    out = jax.block_until_ready(discriminator_forward(x, kparams))

    # Pure-JAX references.
    w1, b1, w2, b2, w3, b3 = params
    xf = x.reshape(B, -1)

    def ref_forward(cast_bf16):
        c = (lambda a: a.astype(jnp.bfloat16)) if cast_bf16 else (lambda a: a)
        r = jnp.dot(c(xf), c(w1), preferred_element_type=jnp.float32) + b1
        r = jnp.where(r > 0, r, 0.01 * r)
        r = jnp.dot(c(r), c(w2), preferred_element_type=jnp.float32) + b2
        r = jnp.where(r > 0, r, 0.01 * r)
        logit = jnp.sum(r * w3, axis=-1, keepdims=True) + b3
        return jax.nn.sigmoid(logit)

    ref_matched = ref_forward(cast_bf16=True)   # same bf16-weight / f32-acc math
    ref_f32 = ref_forward(cast_bf16=False)      # exact f32 nn.Linear semantics

    assert out.shape == (B, 1)
    assert bool(jnp.all((out > 0.0) & (out <= 1.0)))
    assert jnp.allclose(out, ref_matched, atol=2e-3, rtol=2e-3)
    assert jnp.allclose(out, ref_f32, atol=3e-2, rtol=3e-2)

    print("KERNEL_OK")
</pallas_src>

<mosaic_0001>
module attributes {stable_mosaic.version = 11 : i64} {
  func.func @_disc_kernel(%arg0: i32, %arg1: memref<2x1024xf32, #tpu.memory_space<vmem>>, %arg2: memref<1024x256xbf16, #tpu.memory_space<vmem>>, %arg3: memref<256x128xbf16, #tpu.memory_space<vmem>>, %arg4: memref<1x513xf32, #tpu.memory_space<vmem>>, %arg5: memref<2x1xf32, #tpu.memory_space<vmem>>) attributes {dimension_semantics = [#tpu.dimension_semantics<parallel>], iteration_bounds = array<i64: 1>, scalar_prefetch = 0 : i64, scratch_operands = 0 : i64, tpu.core_type = #tpu.core_type<tc>, window_params = [{transform_indices = @transform_0, window_bounds = array<i64: 2, 1024>}, {pipeline_mode = #tpu.pipeline_mode<synchronous>, transform_indices = @transform_1, window_bounds = array<i64: 1024, 256>}, {pipeline_mode = #tpu.pipeline_mode<synchronous>, transform_indices = @transform_2, window_bounds = array<i64: 256, 128>}, {pipeline_mode = #tpu.pipeline_mode<synchronous>, transform_indices = @transform_3, window_bounds = array<i64: 1, 513>}, {transform_indices = @transform_4, window_bounds = array<i64: 2, 1>}]} {
    %c0 = arith.constant 0 : index
    %c0_0 = arith.constant 0 : index
    %0 = vector.load %arg1[%c0, %c0_0] : memref<2x1024xf32, #tpu.memory_space<vmem>>, vector<2x1024xf32>
    %1 = arith.truncf %0 : vector<2x1024xf32> to vector<2x1024xbf16>
    %c0_1 = arith.constant 0 : index
    %c0_2 = arith.constant 0 : index
    %2 = vector.load %arg4[%c0_1, %c0_2] : memref<1x513xf32, #tpu.memory_space<vmem>>, vector<1x256xf32>
    %c0_3 = arith.constant 0 : index
    %c256 = arith.constant 256 : index
    %3 = vector.load %arg4[%c0_3, %c256] : memref<1x513xf32, #tpu.memory_space<vmem>>, vector<1x128xf32>
    %c0_4 = arith.constant 0 : index
    %c384 = arith.constant 384 : index
    %4 = vector.load %arg4[%c0_4, %c384] : memref<1x513xf32, #tpu.memory_space<vmem>>, vector<1x128xf32>
    %c0_5 = arith.constant 0 : index
    %c512 = arith.constant 512 : index
    %5 = vector.load %arg4[%c0_5, %c512] : memref<1x513xf32, #tpu.memory_space<vmem>>, vector<1x1xf32>
    %c0_6 = arith.constant 0 : index
    %c0_7 = arith.constant 0 : index
    %6 = vector.load %arg2[%c0_6, %c0_7] : memref<1024x256xbf16, #tpu.memory_space<vmem>>, vector<1024x256xbf16>
    %cst = arith.constant dense<0.000000e+00> : vector<2x256xf32>
    %7 = tpu.matmul %1, %6, %cst {dimension_numbers = #tpu.dot_dimension_numbers<[1], [0], [0], [1], [0, 0, 1, 1], [], []>} : vector<2x1024xbf16>, vector<1024x256xbf16>, vector<2x256xf32> -> vector<2x256xf32>
    %8 = vector.broadcast %2 : vector<1x256xf32> to vector<2x256xf32>
    %9 = arith.addf %7, %8 : vector<2x256xf32>
    %cst_8 = arith.constant 0.000000e+00 : f32
    %10 = vector.broadcast %cst_8 : f32 to vector<2x256xf32>
    %11 = arith.cmpf ogt, %9, %10 : vector<2x256xf32>
    %cst_9 = arith.constant 0.00999999977 : f32
    %12 = vector.broadcast %cst_9 : f32 to vector<2x256xf32>
    %13 = arith.mulf %12, %9 : vector<2x256xf32>
    %14 = arith.select %11, %9, %13 : vector<2x256xi1>, vector<2x256xf32>
    %15 = arith.truncf %14 : vector<2x256xf32> to vector<2x256xbf16>
    %c0_10 = arith.constant 0 : index
    %c0_11 = arith.constant 0 : index
    %16 = vector.load %arg3[%c0_10, %c0_11] : memref<256x128xbf16, #tpu.memory_space<vmem>>, vector<256x128xbf16>
    %cst_12 = arith.constant dense<0.000000e+00> : vector<2x128xf32>
    %17 = tpu.matmul %15, %16, %cst_12 {dimension_numbers = #tpu.dot_dimension_numbers<[1], [0], [0], [1], [0, 0, 1, 1], [], []>} : vector<2x256xbf16>, vector<256x128xbf16>, vector<2x128xf32> -> vector<2x128xf32>
    %18 = vector.broadcast %3 : vector<1x128xf32> to vector<2x128xf32>
    %19 = arith.addf %17, %18 : vector<2x128xf32>
    %cst_13 = arith.constant 0.000000e+00 : f32
    %20 = vector.broadcast %cst_13 : f32 to vector<2x128xf32>
    %21 = arith.cmpf ogt, %19, %20 : vector<2x128xf32>
    %cst_14 = arith.constant 0.00999999977 : f32
    %22 = vector.broadcast %cst_14 : f32 to vector<2x128xf32>
    %23 = arith.mulf %22, %19 : vector<2x128xf32>
    %24 = arith.select %21, %19, %23 : vector<2x128xi1>, vector<2x128xf32>
    %25 = vector.broadcast %4 : vector<1x128xf32> to vector<2x128xf32>
    %26 = arith.mulf %24, %25 : vector<2x128xf32>
    %cst_15 = arith.constant dense<0.000000e+00> : vector<2xf32>
    %27 = vector.multi_reduction <add>, %26, %cst_15 [1] : vector<2x128xf32> to vector<2xf32>
    %28 = vector.shape_cast %27 : vector<2xf32> to vector<2x1xf32>
    %29 = vector.broadcast %5 : vector<1x1xf32> to vector<2x1xf32>
    %30 = arith.addf %28, %29 : vector<2x1xf32>
    %cst_16 = arith.constant 0.000000e+00 : f32
    %31 = vector.broadcast %cst_16 : f32 to vector<2x1xf32>
    %32 = arith.subf %31, %30 : vector<2x1xf32>
    %33 = math.exp %32 : vector<2x1xf32>
    %cst_17 = arith.constant 1.000000e+00 : f32
    %34 = vector.broadcast %cst_17 : f32 to vector<2x1xf32>
    %35 = arith.addf %34, %33 : vector<2x1xf32>
    %36 = tpu.reciprocal %35 : vector<2x1xf32> -> vector<2x1xf32>
    %c0_18 = arith.constant 0 : index
    %c0_19 = arith.constant 0 : index
    %37 = vector.load %arg5[%c0_18, %c0_19] : memref<2x1xf32, #tpu.memory_space<vmem>>, vector<2x1xf32>
    tpu.vector_store %arg5[%c0_18, %c0_19], %36 {strides = array<i32>} : memref<2x1xf32, #tpu.memory_space<vmem>>, vector<2x1xf32>,
    return
  }
  func.func @transform_0(%arg0: i32) -> (i32, i32) {
    %c0_i32 = arith.constant 0 : i32
    %c0_i32_0 = arith.constant 0 : i32
    return %arg0, %c0_i32 : i32, i32
  }
  func.func @transform_1(%arg0: i32) -> (i32, i32) {
    %c0_i32 = arith.constant 0 : i32
    %c0_i32_0 = arith.constant 0 : i32
    %c0_i32_1 = arith.constant 0 : i32
    return %c0_i32, %c0_i32_0 : i32, i32
  }
  func.func @transform_2(%arg0: i32) -> (i32, i32) {
    %c0_i32 = arith.constant 0 : i32
    %c0_i32_0 = arith.constant 0 : i32
    %c0_i32_1 = arith.constant 0 : i32
    return %c0_i32, %c0_i32_0 : i32, i32
  }
  func.func @transform_3(%arg0: i32) -> (i32, i32) {
    %c0_i32 = arith.constant 0 : i32
    %c0_i32_0 = arith.constant 0 : i32
    %c0_i32_1 = arith.constant 0 : i32
    return %c0_i32, %c0_i32_0 : i32, i32
  }
  func.func @transform_4(%arg0: i32) -> (i32, i32) {
    %c0_i32 = arith.constant 0 : i32
    %c0_i32_0 = arith.constant 0 : i32
    return %arg0, %c0_i32 : i32, i32
  }
}

module attributes {stable_mosaic.version = 11 : i64} {
  func.func @_disc_kernel(%arg0: i32, %arg1: memref<2x1024xf32, #tpu.memory_space<vmem>>, %arg2: memref<1024x256xbf16, #tpu.memory_space<vmem>>, %arg3: memref<256x128xbf16, #tpu.memory_space<vmem>>, %arg4: memref<1x513xf32, #tpu.memory_space<vmem>>, %arg5: memref<2x1xf32, #tpu.memory_space<vmem>>) attributes {dimension_semantics = [#tpu.dimension_semantics<parallel>], iteration_bounds = array<i64: 1>, scalar_prefetch = 0 : i64, scratch_operands = 0 : i64, tpu.core_type = #tpu.core_type<tc>, window_params = [{transform_indices = @transform_0, window_bounds = array<i64: 2, 1024>}, {pipeline_mode = #tpu.pipeline_mode<synchronous>, transform_indices = @transform_1, window_bounds = array<i64: 1024, 256>}, {pipeline_mode = #tpu.pipeline_mode<synchronous>, transform_indices = @transform_2, window_bounds = array<i64: 256, 128>}, {pipeline_mode = #tpu.pipeline_mode<synchronous>, transform_indices = @transform_3, window_bounds = array<i64: 1, 513>}, {transform_indices = @transform_4, window_bounds = array<i64: 2, 1>}]} {
    %c0 = arith.constant 0 : index
    %c0_0 = arith.constant 0 : index
    %0 = vector.load %arg1[%c0, %c0_0] : memref<2x1024xf32, #tpu.memory_space<vmem>>, vector<2x1024xf32>
    %1 = arith.truncf %0 : vector<2x1024xf32> to vector<2x1024xbf16>
    %c0_1 = arith.constant 0 : index
    %c0_2 = arith.constant 0 : index
    %2 = vector.load %arg4[%c0_1, %c0_2] : memref<1x513xf32, #tpu.memory_space<vmem>>, vector<1x256xf32>
    %c0_3 = arith.constant 0 : index
    %c256 = arith.constant 256 : index
    %3 = vector.load %arg4[%c0_3, %c256] : memref<1x513xf32, #tpu.memory_space<vmem>>, vector<1x128xf32>
    %c0_4 = arith.constant 0 : index
    %c384 = arith.constant 384 : index
    %4 = vector.load %arg4[%c0_4, %c384] : memref<1x513xf32, #tpu.memory_space<vmem>>, vector<1x128xf32>
    %c0_5 = arith.constant 0 : index
    %c512 = arith.constant 512 : index
    %5 = vector.load %arg4[%c0_5, %c512] : memref<1x513xf32, #tpu.memory_space<vmem>>, vector<1x1xf32>
    %c0_6 = arith.constant 0 : index
    %c0_7 = arith.constant 0 : index
    %6 = vector.load %arg2[%c0_6, %c0_7] : memref<1024x256xbf16, #tpu.memory_space<vmem>>, vector<1024x256xbf16>
    %cst = arith.constant dense<0.000000e+00> : vector<2x256xf32>
    %7 = tpu.matmul %1, %6, %cst {dimension_numbers = #tpu.dot_dimension_numbers<[1], [0], [0], [1], [0, 0, 1, 1], [], []>} : vector<2x1024xbf16>, vector<1024x256xbf16>, vector<2x256xf32> -> vector<2x256xf32>
    %8 = vector.broadcast %2 : vector<1x256xf32> to vector<2x256xf32>
    %9 = arith.addf %7, %8 : vector<2x256xf32>
    %cst_8 = arith.constant 0.000000e+00 : f32
    %10 = vector.broadcast %cst_8 : f32 to vector<2x256xf32>
    %11 = arith.cmpf ogt, %9, %10 : vector<2x256xf32>
    %cst_9 = arith.constant 0.00999999977 : f32
    %12 = vector.broadcast %cst_9 : f32 to vector<2x256xf32>
    %13 = arith.mulf %12, %9 : vector<2x256xf32>
    %14 = arith.select %11, %9, %13 : vector<2x256xi1>, vector<2x256xf32>
    %15 = arith.truncf %14 : vector<2x256xf32> to vector<2x256xbf16>
    %c0_10 = arith.constant 0 : index
    %c0_11 = arith.constant 0 : index
    %16 = vector.load %arg3[%c0_10, %c0_11] : memref<256x128xbf16, #tpu.memory_space<vmem>>, vector<256x128xbf16>
    %cst_12 = arith.constant dense<0.000000e+00> : vector<2x128xf32>
    %17 = tpu.matmul %15, %16, %cst_12 {dimension_numbers = #tpu.dot_dimension_numbers<[1], [0], [0], [1], [0, 0, 1, 1], [], []>} : vector<2x256xbf16>, vector<256x128xbf16>, vector<2x128xf32> -> vector<2x128xf32>
    %18 = vector.broadcast %3 : vector<1x128xf32> to vector<2x128xf32>
    %19 = arith.addf %17, %18 : vector<2x128xf32>
    %cst_13 = arith.constant 0.000000e+00 : f32
    %20 = vector.broadcast %cst_13 : f32 to vector<2x128xf32>
    %21 = arith.cmpf ogt, %19, %20 : vector<2x128xf32>
    %cst_14 = arith.constant 0.00999999977 : f32
    %22 = vector.broadcast %cst_14 : f32 to vector<2x128xf32>
    %23 = arith.mulf %22, %19 : vector<2x128xf32>
    %24 = arith.select %21, %19, %23 : vector<2x128xi1>, vector<2x128xf32>
    %25 = vector.broadcast %4 : vector<1x128xf32> to vector<2x128xf32>
    %26 = arith.mulf %24, %25 : vector<2x128xf32>
    %cst_15 = arith.constant dense<0.000000e+00> : vector<2xf32>
    %27 = vector.multi_reduction <add>, %26, %cst_15 [1] : vector<2x128xf32> to vector<2xf32>
    %28 = vector.shape_cast %27 : vector<2xf32> to vector<2x1xf32>
    %29 = vector.broadcast %5 : vector<1x1xf32> to vector<2x1xf32>
    %30 = arith.addf %28, %29 : vector<2x1xf32>
    %cst_16 = arith.constant 0.000000e+00 : f32
    %31 = vector.broadcast %cst_16 : f32 to vector<2x1xf32>
    %32 = arith.subf %31, %30 : vector<2x1xf32>
    %33 = math.exp %32 : vector<2x1xf32>
    %cst_17 = arith.constant 1.000000e+00 : f32
    %34 = vector.broadcast %cst_17 : f32 to vector<2x1xf32>
    %35 = arith.addf %34, %33 : vector<2x1xf32>
    %36 = tpu.reciprocal %35 : vector<2x1xf32> -> vector<2x1xf32>
    %c0_18 = arith.constant 0 : index
    %c0_19 = arith.constant 0 : index
    %37 = vector.load %arg5[%c0_18, %c0_19] : memref<2x1xf32, #tpu.memory_space<vmem>>, vector<2x1xf32>
    tpu.vector_store %arg5[%c0_18, %c0_19], %36 {strides = array<i32>} : memref<2x1xf32, #tpu.memory_space<vmem>>, vector<2x1xf32>,
    return
  }
  func.func @transform_0(%arg0: i32) -> (i32, i32) {
    %c0_i32 = arith.constant 0 : i32
    %c0_i32_0 = arith.constant 0 : i32
    return %arg0, %c0_i32 : i32, i32
  }
  func.func @transform_1(%arg0: i32) -> (i32, i32) {
    %c0_i32 = arith.constant 0 : i32
    %c0_i32_0 = arith.constant 0 : i32
    %c0_i32_1 = arith.constant 0 : i32
    return %c0_i32, %c0_i32_0 : i32, i32
  }
  func.func @transform_2(%arg0: i32) -> (i32, i32) {
    %c0_i32 = arith.constant 0 : i32
    %c0_i32_0 = arith.constant 0 : i32
    %c0_i32_1 = arith.constant 0 : i32
    return %c0_i32, %c0_i32_0 : i32, i32
  }
  func.func @transform_3(%arg0: i32) -> (i32, i32) {
    %c0_i32 = arith.constant 0 : i32
    %c0_i32_0 = arith.constant 0 : i32
    %c0_i32_1 = arith.constant 0 : i32
    return %c0_i32, %c0_i32_0 : i32, i32
  }
  func.func @transform_4(%arg0: i32) -> (i32, i32) {
    %c0_i32 = arith.constant 0 : i32
    %c0_i32_0 = arith.constant 0 : i32
    return %arg0, %c0_i32 : i32, i32
  }
}

</mosaic_0001>

<bundles_post_ra>
// kernel: tpu_custom_call.1
= control target key start
LH: loop header
LB: loop body
LE: loop exit
PB: predicated region body
PF: predicated region fallthrough
CT: control target
= control target key end

     0   :  { %9 = vsyncpa [#allocation3], 0  ;;  %s1854_s0 = inlined_call_operand.hbm [shape: f32[2,1024], index: 0, kind: input, shape index: {}]   ;;  %s1855_s1 = inlined_call_operand.hbm [shape: bf16[1024,256], index: 1, kind: input, shape index: {}]   ;;  %s1856_s2 = inlined_call_operand.hbm [shape: bf16[256,128], index: 2, kind: input, shape index: {}]   ;;  %s1857_s3 = inlined_call_operand.vmem [shape: f32[1,513], index: 3, kind: input, shape index: {}]   ;;  %s1858_s4 = inlined_call_operand.vmem [shape: f32[2,1], index: 4, kind: output, shape index: {}]  }
   0x1   :  { %10 = vsyncpa [#allocation5], 0  ;;  %s1747_s15 = smov [#allocation4]   ;;  %s1677_s19 = scalar_lea.hbm %s1855_s1, 16384 }
   0x2   :  { %s26_s16 = sshll.u32 %s1747_s15, 4  ;;  %p1678_p0 = scmp.ne.s32.totalorder %s1855_s1, %s1677_s19  ;;  %s27_s16 = int_to_ptr.vmem [resolvable:$true] %s26_s16 }
   0x3   :  { %p1681_p1 = scmp.lt.u32.totalorder %s1677_s19, %s1855_s1 }
   0x5   :  { %p1683_p2 = pnand %p1681_p1, %p1678_p0 }
   0x7   :  { %1686 = shalt.err (!%p1683_p2)
}
   0x8   :  { %s1687_s24 = scalar_lea.vmem %s27_s16, 16384  ;;  %p1692_p4 = scmp.lt.s32.totalorder %s27_s16, %s27_s16 }
   0x9   :  { %p1688_p3 = scmp.ne.s32.totalorder %s27_s16, %s1687_s24  ;;  %p1693_p5 = scmp.lt.s32.totalorder %s1687_s24, %s1687_s24 }
   0xb   :  { %p1694_p6 = por %p1693_p5, %p1692_p4 }
   0xd   :  { %p1695_p7 = pnand %p1694_p6, %p1688_p3 }
   0xf   :  { %1698 = shalt.err (!%p1695_p7)
}
  0x10   :  { %s1748_s25 = smov 128   ;;  %s1749_s26 = smov 8  }
  0x11   :  { %32 = dma.hbm_to_vmem [thread:$0]  %s1855_s1, 16384, %s27_s16, [#allocation5], %s1748_s25, %s1748_s25, %s1749_s26  }
  0x12   :  { %s1750_s29 = smov [#allocation2]   ;;  %s1751_s5 = smov [#allocation6]  }
  0x13   :  { %s17_s30 = sshll.u32 %s1750_s29, 4  ;;  %s38_s6 = sshll.u32 %s1751_s5, 4  ;;  %s18_s30 = int_to_ptr.vmem [resolvable:$true] %s17_s30  ;;  %s39_s6 = int_to_ptr.vmem [resolvable:$true] %s38_s6 }
  0x14   :  { %s1699_s9 = scalar_lea.hbm %s1854_s0, 256 }
  0x15   :  { %p1700_p8 = scmp.ne.s32.totalorder %s1854_s0, %s1699_s9  ;;  %p1703_p9 = scmp.lt.u32.totalorder %s1699_s9, %s1854_s0 }
  0x17   :  { %p1705_p10 = pnand %p1703_p9, %p1700_p8 }
  0x19   :  { %1708 = shalt.err (!%p1705_p10)
}
  0x1a   :  { %s1709_s1 = scalar_lea.vmem %s18_s30, 256  ;;  %p1714_p12 = scmp.lt.s32.totalorder %s18_s30, %s18_s30 }
  0x1b   :  { %p1710_p11 = scmp.ne.s32.totalorder %s18_s30, %s1709_s1  ;;  %p1715_p13 = scmp.lt.s32.totalorder %s1709_s1, %s1709_s1 }
  0x1d   :  { %p1716_p0 = por %p1715_p13, %p1714_p12 }
  0x1f   :  { %p1717_p1 = pnand %p1716_p0, %p1710_p11 }
  0x21   :  { %1720 = shalt.err (!%p1717_p1)
}
  0x22   :  { %20 = dma.hbm_to_vmem [thread:$0]  %s1854_s0, 256, %s18_s30, [#allocation3]  }
  0x23   :  { %s1721_s18 = scalar_lea.hbm %s1856_s2, 2048 }
  0x24   :  { %p1722_p2 = scmp.ne.s32.totalorder %s1856_s2, %s1721_s18  ;;  %p1725_p3 = scmp.lt.u32.totalorder %s1721_s18, %s1856_s2 }
  0x26   :  { %p1727_p4 = pnand %p1725_p3, %p1722_p2 }
  0x28   :  { %1730 = shalt.err (!%p1727_p4)
}
  0x29   :  { %s1731_s23 = scalar_lea.vmem %s39_s6, 2048  ;;  %p1736_p6 = scmp.lt.s32.totalorder %s39_s6, %s39_s6 }
  0x2a   :  { %p1732_p5 = scmp.ne.s32.totalorder %s39_s6, %s1731_s23  ;;  %p1737_p7 = scmp.lt.s32.totalorder %s1731_s23, %s1731_s23 }
  0x2c   :  { %p1738_p8 = por %p1737_p7, %p1736_p6 }
  0x2e   :  { %p1739_p9 = pnand %p1738_p8, %p1732_p5 }
  0x30   :  { %1742 = shalt.err (!%p1739_p9)
}
  0x31   :  { %s1752_s0 = smov 64   ;;  %s1753_s24 = smov 4  }
  0x32   :  { %44 = dma.hbm_to_vmem [thread:$0]  %s1856_s2, 2048, %s39_s6, [#allocation5], %s1752_s0, %s1752_s0, %s1753_s24  }
  0x33   :  { %1743 = dma.done.wait [#allocation3], 256  }
  0x34   :  { %1744 = vsyncadd [#allocation3], 4294967040 }
  0x35   :  { %1745 = dma.done.wait [#allocation5], 18432  }
  0x36   :  { %1746 = vsyncadd [#allocation5], 4294948864  ;;  %v1463_v0 = vld [vmem:[#allocation4 + $0x4] ss:$8 sps:$4 sm:$0xff]   ;;  %v1467_v2 = vld [vmem:[#allocation4] ss:$8 sps:$4 sm:$0xff]   ;;  %v65_v38 = vlaneseq }
  0x37   :  { %v1465_v1 = vld [vmem:[#allocation4 + $0x204] ss:$8 sps:$4 sm:$0xff]   ;;  %894 = vmatprep.subr.bf16.mxu1 %v1463_v0  ;;  %v1468_v3 = vld [vmem:[#allocation4 + $0x200] ss:$8 sps:$4 sm:$0xff]   ;;  %v1469_v4 = vld [vmem:[#allocation4 + $0x14] ss:$8 sps:$4 sm:$0xff]  }
  0x38   :  { %976 = vmatprep.subr.bf16.mxu0 %v1465_v1  ;;  %895 = vmatpush1.bf16.msra.mxu1 %v1467_v2  ;;  %v1471_v5 = vld [vmem:[#allocation4 + $0x214] ss:$8 sps:$4 sm:$0xff]   ;;  %v1473_v6 = vld [vmem:[#allocation4 + $0x10] ss:$8 sps:$4 sm:$0xff]   ;;  %v1475_v8 = vld [vmem:[#allocation4 + $0x24] ss:$8 sps:$4 sm:$0xff]  }
  0x39   :  { %977 = vmatpush1.bf16.msra.mxu0 %v1468_v3  ;;  %896 = vmatprep.subr.bf16.mxu1 %v1469_v4  ;;  %v1474_v7 = vld [vmem:[#allocation4 + $0x210] ss:$8 sps:$4 sm:$0xff]   ;;  %v1477_v9 = vld [vmem:[#allocation4 + $0x224] ss:$8 sps:$4 sm:$0xff]   ;;  %v1479_v10 = vld [vmem:[#allocation4 + $0x20] ss:$8 sps:$4 sm:$0xff]  }
  0x3a   :  { %978 = vmatprep.subr.bf16.mxu0 %v1471_v5  ;;  %v1480_v11 = vld [vmem:[#allocation4 + $0x220] ss:$8 sps:$4 sm:$0xff]   ;;  %v1481_v12 = vld [vmem:[#allocation4 + $0x34] ss:$8 sps:$4 sm:$0xff]   ;;  %v1485_v14 = vld [vmem:[#allocation4 + $0x30] ss:$8 sps:$4 sm:$0xff]  }
  0x3b   :  { %v1483_v13 = vld [vmem:[#allocation4 + $0x234] ss:$8 sps:$4 sm:$0xff]   ;;  %v1486_v15 = vld [vmem:[#allocation4 + $0x230] ss:$8 sps:$4 sm:$0xff]   ;;  %v1487_v16 = vld [vmem:[#allocation4 + $0x44] ss:$8 sps:$4 sm:$0xff]  }
  0x3c   :  { %897 = vmatpush1.bf16.msra.mxu1 %v1473_v6  ;;  %v1489_v17 = vld [vmem:[#allocation4 + $0x244] ss:$8 sps:$4 sm:$0xff]   ;;  %v1491_v18 = vld [vmem:[#allocation4 + $0x40] ss:$8 sps:$4 sm:$0xff]   ;;  %v1493_v20 = vld [vmem:[#allocation4 + $0x54] ss:$8 sps:$4 sm:$0xff]  }
  0x3d   :  { %979 = vmatpush1.bf16.msra.mxu0 %v1474_v7  ;;  %898 = vmatprep.subr.bf16.mxu1 %v1475_v8  ;;  %v1492_v19 = vld [vmem:[#allocation4 + $0x240] ss:$8 sps:$4 sm:$0xff]   ;;  %v1495_v21 = vld [vmem:[#allocation4 + $0x254] ss:$8 sps:$4 sm:$0xff]   ;;  %v1497_v22 = vld [vmem:[#allocation4 + $0x50] ss:$8 sps:$4 sm:$0xff]  }
  0x3e   :  { %980 = vmatprep.subr.bf16.mxu0 %v1477_v9  ;;  %v1498_v23 = vld [vmem:[#allocation4 + $0x250] ss:$8 sps:$4 sm:$0xff]   ;;  %v1499_v24 = vld [vmem:[#allocation4 + $0x64] ss:$8 sps:$4 sm:$0xff]   ;;  %v1503_v26 = vld [vmem:[#allocation4 + $0x60] ss:$8 sps:$4 sm:$0xff]  }
  0x3f   :  { %v1501_v25 = vld [vmem:[#allocation4 + $0x264] ss:$8 sps:$4 sm:$0xff]   ;;  %v1504_v27 = vld [vmem:[#allocation4 + $0x260] ss:$8 sps:$4 sm:$0xff]   ;;  %v1505_v28 = vld [vmem:[#allocation4 + $0x74] ss:$8 sps:$4 sm:$0xff]  }
  0x40   :  { %899 = vmatpush1.bf16.msra.mxu1 %v1479_v10  ;;  %v1507_v29 = vld [vmem:[#allocation4 + $0x274] ss:$8 sps:$4 sm:$0xff]   ;;  %v1509_v30 = vld [vmem:[#allocation4 + $0x70] ss:$8 sps:$4 sm:$0xff]   ;;  %v1511_v32 = vld [vmem:[#allocation4 + $0x84] ss:$8 sps:$4 sm:$0xff]  }
  0x41   :  { %981 = vmatpush1.bf16.msra.mxu0 %v1480_v11  ;;  %900 = vmatprep.subr.bf16.mxu1 %v1481_v12  ;;  %v1510_v31 = vld [vmem:[#allocation4 + $0x270] ss:$8 sps:$4 sm:$0xff]   ;;  %v1513_v33 = vld [vmem:[#allocation4 + $0x284] ss:$8 sps:$4 sm:$0xff]   ;;  %v1515_v34 = vld [vmem:[#allocation4 + $0x80] ss:$8 sps:$4 sm:$0xff]  }
  0x42   :  { %982 = vmatprep.subr.bf16.mxu0 %v1483_v13  ;;  %v1516_v35 = vld [vmem:[#allocation4 + $0x280] ss:$8 sps:$4 sm:$0xff]   ;;  %v1754_v36 = vmov 1983009808   ;;  %v1517_v39 = vld [vmem:[#allocation4 + $0x94] ss:$8 sps:$4 sm:$0xff]  }
  0x43   :  { %v63_v37 = vunpack.c.l.s4 %v1754_v36  ;;  %v1519_v40 = vld [vmem:[#allocation4 + $0x294] ss:$8 sps:$4 sm:$0xff]   ;;  %v1521_v41 = vld [vmem:[#allocation4 + $0x90] ss:$8 sps:$4 sm:$0xff]   ;;  %v1816_v43 = vshrl.u32 %v65_v38, 7  ;;  %vm1250_vm3 = vcmask 1041408  }
  0x44   :  { %901 = vmatpush1.bf16.msra.mxu1 %v1485_v14  ;;  %v1522_v44 = vld [vmem:[#allocation4 + $0x290] ss:$8 sps:$4 sm:$0xff]   ;;  %v1523_v45 = vld [vmem:[#allocation4 + $0xa4] ss:$8 sps:$4 sm:$0xff]   ;;  %v1527_v47 = vld [vmem:[#allocation4 + $0xa0] ss:$8 sps:$4 sm:$0xff]  }
  0x45   :  { %983 = vmatpush1.bf16.msra.mxu0 %v1486_v15  ;;  %902 = vmatprep.subr.bf16.mxu1 %v1487_v16  ;;  %v64_v42 = vunpack.c.0.s8 %v63_v37  ;;  %v1525_v46 = vld [vmem:[#allocation4 + $0x2a4] ss:$8 sps:$4 sm:$0xff]   ;;  %v1528_v48 = vld [vmem:[#allocation4 + $0x2a0] ss:$8 sps:$4 sm:$0xff]   ;;  %v1529_v50 = vld [vmem:[#allocation4 + $0xb4] ss:$8 sps:$4 sm:$0xff]  }
  0x46   :  { %984 = vmatprep.subr.bf16.mxu0 %v1489_v17  ;;  %v1531_v51 = vld [vmem:[#allocation4 + $0x2b4] ss:$8 sps:$4 sm:$0xff]   ;;  %v1533_v53 = vld [vmem:[#allocation4 + $0xb0] ss:$8 sps:$4 sm:$0xff]   ;;  %v1535_v57 = vld [vmem:[#allocation4 + $0xc4] ss:$8 sps:$4 sm:$0xff]  }
  0x47   :  { %v67_v49 = vsub.s32 %v64_v42, %v1816_v43  ;;  %v57_v52 = vld [vmem:[#allocation2] sm:$0xff]  ;;  %v58_v56 = vld [vmem:[#allocation2 + $0x8] sm:$0xff]  ;;  %v1537_v58 = vld [vmem:[#allocation4 + $0x2c4] ss:$8 sps:$4 sm:$0xff]   ;;  %vm1266_vm4 = vcmask 1024  }
  0x48   :  { %903 = vmatpush1.bf16.msra.mxu1 %v1491_v18  ;;  %v1534_v55 = vld [vmem:[#allocation4 + $0x2b0] ss:$8 sps:$4 sm:$0xff]   ;;  %v1539_v63 = vld [vmem:[#allocation4 + $0xc0] ss:$8 sps:$4 sm:$0xff]   ;;  %v1541_v1 = vld [vmem:[#allocation4 + $0xd4] ss:$8 sps:$4 sm:$0xff]   ;;  %v61_v8 = vcombine.high %v57_v52, %v57_v52  ;;  %v78_v9 = vcombine.high %v58_v56, %v58_v56 }
  0x49   :  { %985 = vmatpush1.bf16.msra.mxu0 %v1492_v19  ;;  %904 = vmatprep.subr.bf16.mxu1 %v1493_v20  ;;  %v1819_v54 = vrot.slane %v57_v52, %v67_v49  ;;  %v85_v60 = vrot.slane %v58_v56, %v67_v49  ;;  %v1540_v0 = vld [vmem:[#allocation4 + $0x2c0] ss:$8 sps:$4 sm:$0xff]   ;;  %v1543_v2 = vld [vmem:[#allocation4 + $0x2d4] ss:$8 sps:$4 sm:$0xff]   ;;  %v1545_v4 = vld [vmem:[#allocation4 + $0xd0] ss:$8 sps:$4 sm:$0xff]  }
  0x4a   :  { %986 = vmatprep.subr.bf16.mxu0 %v1495_v21  ;;  %v1546_v5 = vld [vmem:[#allocation4 + $0x2d0] ss:$8 sps:$4 sm:$0xff]   ;;  %v1547_v6 = vld [vmem:[#allocation4 + $0xe4] ss:$8 sps:$4 sm:$0xff]   ;;  %v1551_v10 = vld [vmem:[#allocation4 + $0xe0] ss:$8 sps:$4 sm:$0xff]   ;;  %v1823_v14 = vrot.slane %v61_v8, %v67_v49  ;;  %v1825_v15 = vrot.slane %v78_v9, %v67_v49 }
  0x4b   :  { %v76_v59 = vcombine.high %v1819_v54, %v1819_v54  ;;  %v93_v62 = vcombine.high %v85_v60, %v85_v60  ;;  %v1549_v7 = vld [vmem:[#allocation4 + $0x2e4] ss:$8 sps:$4 sm:$0xff]   ;;  %v1552_v11 = vld [vmem:[#allocation4 + $0x2e0] ss:$8 sps:$4 sm:$0xff]   ;;  %v1553_v12 = vld [vmem:[#allocation4 + $0xf4] ss:$8 sps:$4 sm:$0xff]  }
  0x4c   :  { %905 = vmatpush1.bf16.msra.mxu1 %v1497_v22  ;;  %v1555_v13 = vld [vmem:[#allocation4 + $0x2f4] ss:$8 sps:$4 sm:$0xff]   ;;  %v1557_v16 = vld [vmem:[#allocation4 + $0xf0] ss:$8 sps:$4 sm:$0xff]   ;;  %v1562_v18 = vld [vmem:[#allocation4 + $0x104] ss:$8 sps:$4 sm:$0xff]   ;;  %v77_v20 = vcombine.high %v1823_v14, %v1823_v14  ;;  %v94_v21 = vcombine.high %v1825_v15, %v1825_v15  ;;  %v103_v22 = vpack.c.bf16 %v1819_v54, %v1819_v54 }
  0x4d   :  { %987 = vmatpush1.bf16.msra.mxu0 %v1498_v23  ;;  %906 = vmatprep.subr.bf16.mxu1 %v1499_v24  ;;  %v104_v61 = vpack.c.bf16 %v76_v59, %v76_v59  ;;  %v108_v3 = vpack.c.bf16 %v93_v62, %v93_v62  ;;  %v1558_v17 = vld [vmem:[#allocation4 + $0x2f0] ss:$8 sps:$4 sm:$0xff]   ;;  %v1566_v19 = vld [vmem:[#allocation4 + $0x304] ss:$8 sps:$4 sm:$0xff]   ;;  %v107_v23 = vpack.c.bf16 %v85_v60, %v85_v60  ;;  %v1560_v24 = vld [vmem:[#allocation4 + $0x100] ss:$8 sps:$4 sm:$0xff]  }
  0x4e   :  { %988 = vmatprep.subr.bf16.mxu0 %v1501_v25  ;;  %v1564_v25 = vld [vmem:[#allocation4 + $0x300] ss:$8 sps:$4 sm:$0xff]   ;;  %v1581_v36 = vld [vmem:[#allocation4 + $0x134] ss:$8 sps:$4 sm:$0xff]   ;;  %v1579_v38 = vld [vmem:[#allocation4 + $0x130] ss:$8 sps:$4 sm:$0xff]  }
  0x4f   :  { %926 = vmatprep.mubr.bf16.mxu1 %v104_v61  ;;  %1008 = vmatprep.mubr.bf16.mxu0 %v108_v3  ;;  %v1584_v37 = vld [vmem:[#allocation4 + $0x334] ss:$8 sps:$4 sm:$0xff]   ;;  %v1585_v42 = vld [vmem:[#allocation4 + $0x140] ss:$8 sps:$4 sm:$0xff]   ;;  %v1599_v49 = vld [vmem:[#allocation4 + $0x164] ss:$8 sps:$4 sm:$0xff]  }
  0x50   :  { %907 = vmatpush1.bf16.msra.mxu1 %v1503_v26  ;;  %v1569_v26 = vld [vmem:[#allocation4 + $0x114] ss:$8 sps:$4 sm:$0xff]   ;;  %v1600_v52 = vld [vmem:[#allocation4 + $0x360] ss:$8 sps:$4 sm:$0xff]   ;;  %v1606_v56 = vld [vmem:[#allocation4 + $0x370] ss:$8 sps:$4 sm:$0xff]  }
  0x51   :  { %989 = vmatpush1.bf16.msra.mxu0 %v1504_v27  ;;  %908 = vmatprep.subr.bf16.mxu1 %v1505_v28  ;;  %v1572_v27 = vld [vmem:[#allocation4 + $0x314] ss:$8 sps:$4 sm:$0xff]   ;;  %v106_v28 = vpack.c.bf16 %v77_v20, %v77_v20  ;;  %v1609_v59 = vld [vmem:[#allocation4 + $0x180] ss:$8 sps:$4 sm:$0xff]   ;;  %v1630_v8 = vld [vmem:[#allocation4 + $0x3b0] ss:$8 sps:$4 sm:$0xff]  }
  0x52   :  { %990 = vmatprep.subr.bf16.mxu0 %v1507_v29  ;;  %v110_v29 = vpack.c.bf16 %v94_v21, %v94_v21  ;;  %v1608_v54 = vld [vmem:[#allocation4 + $0x374] ss:$8 sps:$4 sm:$0xff]   ;;  %v1612_v60 = vld [vmem:[#allocation4 + $0x380] ss:$8 sps:$4 sm:$0xff]   ;;  %v1635_v9 = vld [vmem:[#allocation4 + $0x1c4] ss:$8 sps:$4 sm:$0xff]  }
  0x53   :  { %v1617_v61 = vld [vmem:[#allocation4 + $0x194] ss:$8 sps:$4 sm:$0xff]   ;;  %v1621_v3 = vld [vmem:[#allocation4 + $0x1a0] ss:$8 sps:$4 sm:$0xff]   ;;  %v1650_v20 = vld [vmem:[#allocation4 + $0x3e4] ss:$8 sps:$4 sm:$0xff]  }
  0x54   :  { %909 = vmatpush1.bf16.msra.mxu1 %v1509_v30  ;;  %v1567_v30 = vld [vmem:[#allocation4 + $0x110] ss:$8 sps:$4 sm:$0xff]   ;;  %v1620_v62 = vld [vmem:[#allocation4 + $0x394] ss:$8 sps:$4 sm:$0xff]   ;;  %v1645_v21 = vld [vmem:[#allocation4 + $0x1e0] ss:$8 sps:$4 sm:$0xff]  }
  0x55   :  { %991 = vmatpush1.bf16.msra.mxu0 %v1510_v31  ;;  %910 = vmatprep.subr.bf16.mxu1 %v1511_v32  ;;  %v1570_v31 = vld [vmem:[#allocation4 + $0x310] ss:$8 sps:$4 sm:$0xff]   ;;  %v1575_v32 = vld [vmem:[#allocation4 + $0x124] ss:$8 sps:$4 sm:$0xff]  }
  0x56   :  { %992 = vmatprep.subr.bf16.mxu0 %v1513_v33  ;;  %v1578_v33 = vld [vmem:[#allocation4 + $0x324] ss:$8 sps:$4 sm:$0xff]  }
  0x58   :  { %911 = vmatpush1.bf16.msra.mxu1 %v1515_v34  ;;  %v1573_v34 = vld [vmem:[#allocation4 + $0x120] ss:$8 sps:$4 sm:$0xff]  }
  0x59   :  { %993 = vmatpush1.bf16.msra.mxu0 %v1516_v35  ;;  %912 = vmatprep.subr.bf16.mxu1 %v1517_v39  ;;  %v1576_v35 = vld [vmem:[#allocation4 + $0x320] ss:$8 sps:$4 sm:$0xff]   ;;  %v1582_v39 = vld [vmem:[#allocation4 + $0x330] ss:$8 sps:$4 sm:$0xff]  }
  0x5a   :  { %994 = vmatprep.subr.bf16.mxu0 %v1519_v40  ;;  %v1587_v40 = vld [vmem:[#allocation4 + $0x144] ss:$8 sps:$4 sm:$0xff]  }
  0x5c   :  { %913 = vmatpush1.bf16.msra.mxu1 %v1521_v41  ;;  %v1590_v41 = vld [vmem:[#allocation4 + $0x344] ss:$8 sps:$4 sm:$0xff]  }
  0x5d   :  { %995 = vmatpush1.bf16.msra.mxu0 %v1522_v44  ;;  %914 = vmatprep.subr.bf16.mxu1 %v1523_v45  ;;  %v1588_v44 = vld [vmem:[#allocation4 + $0x340] ss:$8 sps:$4 sm:$0xff]   ;;  %v1593_v45 = vld [vmem:[#allocation4 + $0x154] ss:$8 sps:$4 sm:$0xff]  }
  0x5e   :  { %996 = vmatprep.subr.bf16.mxu0 %v1525_v46  ;;  %v1596_v46 = vld [vmem:[#allocation4 + $0x354] ss:$8 sps:$4 sm:$0xff]  }
  0x60   :  { %915 = vmatpush1.bf16.msra.mxu1 %v1527_v47  ;;  %v1591_v47 = vld [vmem:[#allocation4 + $0x150] ss:$8 sps:$4 sm:$0xff]  }
  0x61   :  { %997 = vmatpush1.bf16.msra.mxu0 %v1528_v48  ;;  %916 = vmatprep.subr.bf16.mxu1 %v1529_v50  ;;  %v1594_v48 = vld [vmem:[#allocation4 + $0x350] ss:$8 sps:$4 sm:$0xff]   ;;  %v1602_v50 = vld [vmem:[#allocation4 + $0x364] ss:$8 sps:$4 sm:$0xff]  }
  0x62   :  { %998 = vmatprep.subr.bf16.mxu0 %v1531_v51  ;;  %v1597_v51 = vld [vmem:[#allocation4 + $0x160] ss:$8 sps:$4 sm:$0xff]  }
  0x64   :  { %917 = vmatpush1.bf16.msra.mxu1 %v1533_v53  ;;  %v1605_v53 = vld [vmem:[#allocation4 + $0x174] ss:$8 sps:$4 sm:$0xff]  }
  0x65   :  { %999 = vmatpush1.bf16.msra.mxu0 %v1534_v55  ;;  %918 = vmatprep.subr.bf16.mxu1 %v1535_v57  ;;  %v1603_v55 = vld [vmem:[#allocation4 + $0x170] ss:$8 sps:$4 sm:$0xff]   ;;  %v1611_v57 = vld [vmem:[#allocation4 + $0x184] ss:$8 sps:$4 sm:$0xff]  }
  0x66   :  { %1000 = vmatprep.subr.bf16.mxu0 %v1537_v58  ;;  %v1614_v58 = vld [vmem:[#allocation4 + $0x384] ss:$8 sps:$4 sm:$0xff]  }
  0x68   :  { %919 = vmatpush1.bf16.msra.mxu1 %v1539_v63  ;;  %v1615_v63 = vld [vmem:[#allocation4 + $0x190] ss:$8 sps:$4 sm:$0xff]  }
  0x69   :  { %1001 = vmatpush1.bf16.msra.mxu0 %v1540_v0  ;;  %920 = vmatprep.subr.bf16.mxu1 %v1541_v1  ;;  %v1618_v0 = vld [vmem:[#allocation4 + $0x390] ss:$8 sps:$4 sm:$0xff]   ;;  %v1623_v1 = vld [vmem:[#allocation4 + $0x1a4] ss:$8 sps:$4 sm:$0xff]  }
  0x6a   :  { %1002 = vmatprep.subr.bf16.mxu0 %v1543_v2  ;;  %v1626_v2 = vld [vmem:[#allocation4 + $0x3a4] ss:$8 sps:$4 sm:$0xff]  }
  0x6c   :  { %921 = vmatpush1.bf16.msra.mxu1 %v1545_v4  ;;  %v1624_v4 = vld [vmem:[#allocation4 + $0x3a0] ss:$8 sps:$4 sm:$0xff]  }
  0x6d   :  { %1003 = vmatpush1.bf16.msra.mxu0 %v1546_v5  ;;  %922 = vmatprep.subr.bf16.mxu1 %v1547_v6  ;;  %v1629_v5 = vld [vmem:[#allocation4 + $0x1b4] ss:$8 sps:$4 sm:$0xff]  }
  0x6e   :  { %1004 = vmatprep.subr.bf16.mxu0 %v1549_v7  ;;  %v1632_v6 = vld [vmem:[#allocation4 + $0x3b4] ss:$8 sps:$4 sm:$0xff]   ;;  %v1627_v7 = vld [vmem:[#allocation4 + $0x1b0] ss:$8 sps:$4 sm:$0xff]  }
  0x70   :  { %923 = vmatpush1.bf16.msra.mxu1 %v1551_v10  ;;  %v1638_v10 = vld [vmem:[#allocation4 + $0x3c4] ss:$8 sps:$4 sm:$0xff]  }
  0x71   :  { %1005 = vmatpush1.bf16.msra.mxu0 %v1552_v11  ;;  %924 = vmatprep.subr.bf16.mxu1 %v1553_v12  ;;  %v1633_v11 = vld [vmem:[#allocation4 + $0x1c0] ss:$8 sps:$4 sm:$0xff]  }
  0x72   :  { %1006 = vmatprep.subr.bf16.mxu0 %v1555_v13  ;;  %v1636_v12 = vld [vmem:[#allocation4 + $0x3c0] ss:$8 sps:$4 sm:$0xff]   ;;  %v1641_v13 = vld [vmem:[#allocation4 + $0x1d4] ss:$8 sps:$4 sm:$0xff]  }
  0x74   :  { %925 = vmatpush1.bf16.msra.mxu1 %v1557_v16  ;;  %v1644_v16 = vld [vmem:[#allocation4 + $0x3d4] ss:$8 sps:$4 sm:$0xff]  }
  0x75   :  { %1007 = vmatpush1.bf16.msra.mxu0 %v1558_v17  ;;  %935 = vmatprep.subr.bf16.mxu1 %v1562_v18  ;;  %v1639_v17 = vld [vmem:[#allocation4 + $0x1d0] ss:$8 sps:$4 sm:$0xff]  }
  0x76   :  { %1017 = vmatprep.subr.bf16.mxu0 %v1566_v19  ;;  %v1642_v18 = vld [vmem:[#allocation4 + $0x3d0] ss:$8 sps:$4 sm:$0xff]   ;;  %v1647_v19 = vld [vmem:[#allocation4 + $0x1e4] ss:$8 sps:$4 sm:$0xff]  }
  0x77   :  { %927 = vmatmul.mubr.bf16.vlgmr.msra.gmra.mrb[0].mxu1 %v103_v22  ;;  %v1648_v22 = vld [vmem:[#allocation4 + $0x3e0] ss:$8 sps:$4 sm:$0xff]  }
  0x78   :  { %1009 = vmatmul.mubr.bf16.vlgmr.msra.gmra.mrb[0].mxu0 %v107_v23  ;;  %936 = vmatpush1.bf16.msra.mxu1 %v1560_v24  ;;  %v1653_v23 = vld [vmem:[#allocation4 + $0x1f4] ss:$8 sps:$4 sm:$0xff]  }
  0x79   :  { %1018 = vmatpush1.bf16.msra.mxu0 %v1564_v25  ;;  %937 = vmatprep.subr.bf16.mxu1 %v1569_v26  ;;  %v1656_v24 = vld [vmem:[#allocation4 + $0x3f4] ss:$8 sps:$4 sm:$0xff]   ;;  %v1651_v25 = vld [vmem:[#allocation4 + $0x1f0] ss:$8 sps:$4 sm:$0xff]  }
  0x7a   :  { %1019 = vmatprep.subr.bf16.mxu0 %v1572_v27  ;;  %967 = vmatprep.mubr.bf16.mxu1 %v106_v28  ;;  %v1654_v26 = vld [vmem:[#allocation4 + $0x3f0] ss:$8 sps:$4 sm:$0xff]   ;;  %v1657_v27 = vld [vmem:[#allocation6 + $0x40] sm:$0xff]   ;;  %v105_v28 = vpack.c.bf16 %v1823_v14, %v1823_v14 }
  0x7b   :  { %1049 = vmatprep.mubr.bf16.mxu0 %v110_v29  ;;  %v109_v29 = vpack.c.bf16 %v1825_v15, %v1825_v15  ;;  %v1664_v14 = vld [vmem:[#allocation6 + $0x18] sm:$0xff]   ;;  %v1666_v15 = vld [vmem:[#allocation6 + $0x20] sm:$0xff]  }
  0x7c   :  { %938 = vmatpush1.bf16.msra.mxu1 %v1567_v30  ;;  %v1658_v30 = vld [vmem:[#allocation6] sm:$0xff]  }
  0x7d   :  { %1020 = vmatpush1.bf16.msra.mxu0 %v1570_v31  ;;  %939 = vmatprep.subr.bf16.mxu1 %v1575_v32  ;;  %v1659_v31 = vld [vmem:[#allocation6 + $0x48] sm:$0xff]  }
  0x7e   :  { %1021 = vmatprep.subr.bf16.mxu0 %v1578_v33  ;;  %v1660_v32 = vld [vmem:[#allocation6 + $0x8] sm:$0xff]   ;;  %v1661_v33 = vld [vmem:[#allocation6 + $0x50] sm:$0xff]  }
  0x80   :  { %940 = vmatpush1.bf16.msra.mxu1 %v1573_v34  ;;  %v1662_v34 = vld [vmem:[#allocation6 + $0x10] sm:$0xff]  }
  0x81   :  { %1022 = vmatpush1.bf16.msra.mxu0 %v1576_v35  ;;  %941 = vmatprep.subr.bf16.mxu1 %v1581_v36  ;;  %v1663_v35 = vld [vmem:[#allocation6 + $0x58] sm:$0xff]   ;;  %v1665_v36 = vld [vmem:[#allocation6 + $0x60] sm:$0xff]  }
  0x82   :  { %1023 = vmatprep.subr.bf16.mxu0 %v1584_v37  ;;  %v1667_v37 = vld [vmem:[#allocation6 + $0x68] sm:$0xff]  }
  0x84   :  { %942 = vmatpush1.bf16.msra.mxu1 %v1579_v38  ;;  %v1668_v38 = vld [vmem:[#allocation6 + $0x28] sm:$0xff]  }
  0x85   :  { %1024 = vmatpush1.bf16.msra.mxu0 %v1582_v39  ;;  %943 = vmatprep.subr.bf16.mxu1 %v1587_v40  ;;  %v1669_v39 = vld [vmem:[#allocation6 + $0x70] sm:$0xff]  }
  0x86   :  { %1025 = vmatprep.subr.bf16.mxu0 %v1590_v41  ;;  %v1670_v40 = vld [vmem:[#allocation6 + $0x30] sm:$0xff]   ;;  %v1671_v41 = vld [vmem:[#allocation6 + $0x78] sm:$0xff]  }
  0x88   :  { %944 = vmatpush1.bf16.msra.mxu1 %v1585_v42  ;;  %v1672_v42 = vld [vmem:[#allocation6 + $0x38] sm:$0xff]  }
  0x89   :  { %1026 = vmatpush1.bf16.msra.mxu0 %v1588_v44  ;;  %945 = vmatprep.subr.bf16.mxu1 %v1593_v45  ;;  %v246_v44 = vsub.s32 0, %v1816_v43  ;;  %v111_v45 = vld [vmem:[%s1857_s3] sm:$0x3] }
  0x8a   :  { %1027 = vmatprep.subr.bf16.mxu0 %v1596_v46  ;;  %v250_v46 = vsub.s32 1, %v1816_v43 }
  0x8c   :  { %946 = vmatpush1.bf16.msra.mxu1 %v1591_v47  ;;  %v247_v47 = vrot.slane %v111_v45, %v246_v44 }
  0x8d   :  { %1028 = vmatpush1.bf16.msra.mxu0 %v1594_v48  ;;  %947 = vmatprep.subr.bf16.mxu1 %v1599_v49  ;;  %v251_v48 = vrot.slane %v111_v45, %v250_v46 }
  0x8e   :  { %1029 = vmatprep.subr.bf16.mxu0 %v1602_v50 }
  0x90   :  { %948 = vmatpush1.bf16.msra.mxu1 %v1597_v51 }
  0x91   :  { %1030 = vmatpush1.bf16.msra.mxu0 %v1600_v52  ;;  %949 = vmatprep.subr.bf16.mxu1 %v1605_v53 }
  0x92   :  { %1031 = vmatprep.subr.bf16.mxu0 %v1608_v54 }
  0x94   :  { %950 = vmatpush1.bf16.msra.mxu1 %v1603_v55 }
  0x95   :  { %1032 = vmatpush1.bf16.msra.mxu0 %v1606_v56  ;;  %951 = vmatprep.subr.bf16.mxu1 %v1611_v57 }
  0x96   :  { %1033 = vmatprep.subr.bf16.mxu0 %v1614_v58 }
  0x98   :  { %952 = vmatpush1.bf16.msra.mxu1 %v1609_v59 }
  0x99   :  { %1034 = vmatpush1.bf16.msra.mxu0 %v1612_v60  ;;  %953 = vmatprep.subr.bf16.mxu1 %v1617_v61 }
  0x9a   :  { %1035 = vmatprep.subr.bf16.mxu0 %v1620_v62 }
  0x9c   :  { %954 = vmatpush1.bf16.msra.mxu1 %v1615_v63 }
  0x9d   :  { %1036 = vmatpush1.bf16.msra.mxu0 %v1618_v0  ;;  %955 = vmatprep.subr.bf16.mxu1 %v1623_v1 }
  0x9e   :  { %1037 = vmatprep.subr.bf16.mxu0 %v1626_v2 }
  0xa0   :  { %956 = vmatpush1.bf16.msra.mxu1 %v1621_v3  ;;  %v1402_v3 = vld [vmem:[%s1857_s3 + $0x2] ss:$0 sm:$0xff] }
  0xa1   :  { %1038 = vmatpush1.bf16.msra.mxu0 %v1624_v4  ;;  %957 = vmatprep.subr.bf16.mxu1 %v1629_v5 }
  0xa2   :  { %1039 = vmatprep.subr.bf16.mxu0 %v1632_v6 }
  0xa4   :  { %958 = vmatpush1.bf16.msra.mxu1 %v1627_v7 }
  0xa5   :  { %1040 = vmatpush1.bf16.msra.mxu0 %v1630_v8  ;;  %959 = vmatprep.subr.bf16.mxu1 %v1635_v9 }
  0xa6   :  { %1041 = vmatprep.subr.bf16.mxu0 %v1638_v10  ;;  %v1419_v10 = vld [vmem:[%s1857_s3 + $0x3] ss:$0 sm:$0xff] }
  0xa8   :  { %960 = vmatpush1.bf16.msra.mxu1 %v1633_v11 }
  0xa9   :  { %1042 = vmatpush1.bf16.msra.mxu0 %v1636_v12  ;;  %961 = vmatprep.subr.bf16.mxu1 %v1641_v13 }
  0xaa   :  { %1043 = vmatprep.subr.bf16.mxu0 %v1644_v16  ;;  %v1420_v16 = vld [vmem:[%s1857_s3 + $0x4] ss:$0 sm:$0xff] }
  0xac   :  { %962 = vmatpush1.bf16.msra.mxu1 %v1639_v17 }
  0xad   :  { %1044 = vmatpush1.bf16.msra.mxu0 %v1642_v18  ;;  %963 = vmatprep.subr.bf16.mxu1 %v1647_v19 }
  0xae   :  { %1045 = vmatprep.subr.bf16.mxu0 %v1650_v20 }
  0xb0   :  { %964 = vmatpush1.bf16.msra.mxu1 %v1645_v21 }
  0xb1   :  { %1046 = vmatpush1.bf16.msra.mxu0 %v1648_v22  ;;  %965 = vmatprep.subr.bf16.mxu1 %v1653_v23 }
  0xb2   :  { %1047 = vmatprep.subr.bf16.mxu0 %v1656_v24 }
  0xb4   :  { %966 = vmatpush1.bf16.msra.mxu1 %v1651_v25 }
  0xb5   :  { %1048 = vmatpush1.bf16.msra.mxu0 %v1654_v26  ;;  %1421 = vmatprep.subr.bf16.mxu1 %v1657_v27 }
  0xb7   :  { %968 = vmatmul.mubr.bf16.vlgmr.msra.gmra.mrb[0].mxu1 %v105_v28 }
  0xb8   :  { %1050 = vmatmul.mubr.bf16.vlgmr.msra.gmra.mrb[0].mxu0 %v109_v29  ;;  %1422 = vmatpush3.bf16.msra.mxu1 %v1658_v30 }
  0xb9   :  { %1423 = vmatprep.subr.bf16.mxu1 %v1659_v31 }
  0xbc   :  { %1424 = vmatpush3.bf16.msra.mxu1 %v1660_v32 }
  0xbd   :  { %1425 = vmatprep.subr.bf16.mxu1 %v1661_v33 }
  0xc0   :  { %1426 = vmatpush3.bf16.msra.mxu1 %v1662_v34 }
  0xc1   :  { %1427 = vmatprep.subr.bf16.mxu1 %v1663_v35 }
  0xc4   :  { %1428 = vmatpush3.bf16.msra.mxu1 %v1664_v14 }
  0xc5   :  { %1429 = vmatprep.subr.bf16.mxu1 %v1665_v36 }
  0xc8   :  { %1430 = vmatpush3.bf16.msra.mxu1 %v1666_v15 }
  0xc9   :  { %1431 = vmatprep.subr.bf16.mxu1 %v1667_v37 }
  0xcc   :  { %1432 = vmatpush3.bf16.msra.mxu1 %v1668_v38 }
  0xcd   :  { %1433 = vmatprep.subr.bf16.mxu1 %v1669_v39 }
  0xd0   :  { %1434 = vmatpush3.bf16.msra.mxu1 %v1670_v40 }
  0xd1   :  { %1435 = vmatprep.subr.bf16.mxu1 %v1671_v41 }
  0xd4   :  { %1436 = vmatpush3.bf16.msra.mxu1 %v1672_v42 }
 0x18a   :  { %v969_v49 = vpop.f32.mrb[0].mxu1 }
 0x18b   :  { %v1051_v50 = vpop.f32.mrb[0].mxu0  ;;  %v1443_v51 = vadd.f32 %v969_v49, %v247_v47  ;;  %v971_v52 = vpop.f32.mrb[1].mxu1 }
 0x18c   :  { %v1053_v53 = vpop.f32.mrb[1].mxu0  ;;  %v1445_v54 = vadd.f32 %v971_v52, %v251_v48  ;;  %v973_v55 = vpop.f32.mrb[2].mxu1 }
 0x18d   :  { %v1055_v56 = vpop.f32.mrb[2].mxu0  ;;  %v1444_v57 = vadd.f32 %v1443_v51, %v1051_v50  ;;  %v974_v58 = vpop.f32.mrb[3].mxu1 }
 0x18e   :  { %v1056_v59 = vpop.f32.mrb[3].mxu0  ;;  %v1446_v60 = vadd.f32 %v1445_v54, %v1053_v53 }
 0x18f   :  { %vm1058_vm0 = vcmp.gt.f32.partialorder %v1444_v57, 0.0  ;;  %v1060_v61 = vmul.f32 0.01, %v1444_v57 }
 0x190   :  { %vm1059_vm1 = vcmp.gt.f32.partialorder %v1446_v60, 0.0  ;;  %v1061_v62 = vmul.f32 0.01, %v1446_v60 }
 0x191   :  { %v1062_v63 = vsel %vm1058_vm0, %v1444_v57, %v1060_v61 }
 0x192   :  { %v1063_v43 = vsel %vm1059_vm1, %v1446_v60, %v1061_v62  ;;  %v1064_v1 = vpack.c.bf16 %v1062_v63, %v1062_v63 }
 0x193   :  { %v1065_v0 = vpack.c.bf16 %v1063_v43, %v1063_v43 }
 0x195   :  { %1232 = vmatprep.mubr.bf16.mxu1 %v1065_v0 }
 0x196   :  { %1233 = vmatmul.mubr.bf16.vlgmr.msra.gmra.mrb[4].mxu1 %v1064_v1 }
 0x269   :  { %v1437_v2 = vpop.f32.mrb[4].mxu1 }
 0x26a   :  { %v1438_v4 = vpop.f32.mrb[5].mxu1 }
 0x26b   :  { %v1439_v5 = vadd.f32 %v1438_v4, %v1437_v2  ;;  %v1440_v6 = vpop.f32.mrb[6].mxu1 }
 0x26c   :  { %v1441_v7 = vpop.f32.mrb[7].mxu1 }
 0x26d   :  { %v1235_v8 = vadd.f32 %v1439_v5, %v1402_v3 }
 0x26f   :  { %v1241_v9 = vmul.f32 0.01, %v1235_v8  ;;  %vm1240_vm2 = vcmp.gt.f32.partialorder %v1235_v8, 0.0 }
 0x271   :  { %v1242_v11 = vsel %vm1240_vm2, %v1235_v8, %v1241_v9 }
 0x272   :  { %v1249_v12 = vmul.f32 %v1419_v10, %v1242_v11 }
 0x274   :  { %v1251_v13 = vsel %vm1250_vm3, %v1249_v12, 0.0 }
 0x275   :  { %1252 = vadd.xlane.f32.xlu0 %v1251_v13 }
 0x302   :  { %v1253_v17 = vpop.xlane.xlu0 %1252 }
 0x303   :  { %v1260_v18 = vadd.f32 %v1420_v16, %v1253_v17 }
 0x305   :  { %v1261_v19 = vsub.f32 0.0, %v1260_v18 }
 0x307   :  { %v1262_v20 = vmul.f32 1.442695, %v1261_v19 }
 0x309   :  { %1673 = vpow2.f32 %v1262_v20 }
 0x313   :  { %v1674_v21 = vpop.eup %1673 }
 0x314   :  { %v1264_v22 = vadd.f32 1.0, %v1674_v21 }
 0x316   :  { %1675 = vrcp.f32 %v1264_v22 }
 0x320   :  { %v1676_v23 = vpop.eup %1675 }
 0x321   :  { %1267 = vst.msk [vmem:[%s1858_s4] sm:$0x3] %vm1266_vm4, %v1676_v23 }
 0x322   :  { %1272 = vsyncpa [#allocation3], 1 }
 0x323   :  { %1273 = vsyncpa [#allocation5], 1 }

// kernel: tpu_custom_call.1
= control target key start
LH: loop header
LB: loop body
LE: loop exit
PB: predicated region body
PF: predicated region fallthrough
CT: control target
= control target key end

     0   :  { %9 = vsyncpa [#allocation3], 0  ;;  %s1854_s0 = inlined_call_operand.hbm [shape: f32[2,1024], index: 0, kind: input, shape index: {}]   ;;  %s1855_s1 = inlined_call_operand.hbm [shape: bf16[1024,256], index: 1, kind: input, shape index: {}]   ;;  %s1856_s2 = inlined_call_operand.hbm [shape: bf16[256,128], index: 2, kind: input, shape index: {}]   ;;  %s1857_s3 = inlined_call_operand.vmem [shape: f32[1,513], index: 3, kind: input, shape index: {}]   ;;  %s1858_s4 = inlined_call_operand.vmem [shape: f32[2,1], index: 4, kind: output, shape index: {}]  }
   0x1   :  { %10 = vsyncpa [#allocation5], 0  ;;  %s1747_s15 = smov [#allocation4]   ;;  %s1677_s19 = scalar_lea.hbm %s1855_s1, 16384 }
   0x2   :  { %s26_s16 = sshll.u32 %s1747_s15, 4  ;;  %p1678_p0 = scmp.ne.s32.totalorder %s1855_s1, %s1677_s19  ;;  %s27_s16 = int_to_ptr.vmem [resolvable:$true] %s26_s16 }
   0x3   :  { %p1681_p1 = scmp.lt.u32.totalorder %s1677_s19, %s1855_s1 }
   0x5   :  { %p1683_p2 = pnand %p1681_p1, %p1678_p0 }
   0x7   :  { %1686 = shalt.err (!%p1683_p2)
}
   0x8   :  { %s1687_s24 = scalar_lea.vmem %s27_s16, 16384  ;;  %p1692_p4 = scmp.lt.s32.totalorder %s27_s16, %s27_s16 }
   0x9   :  { %p1688_p3 = scmp.ne.s32.totalorder %s27_s16, %s1687_s24  ;;  %p1693_p5 = scmp.lt.s32.totalorder %s1687_s24, %s1687_s24 }
   0xb   :  { %p1694_p6 = por %p1693_p5, %p1692_p4 }
   0xd   :  { %p1695_p7 = pnand %p1694_p6, %p1688_p3 }
   0xf   :  { %1698 = shalt.err (!%p1695_p7)
}
  0x10   :  { %s1748_s25 = smov 128   ;;  %s1749_s26 = smov 8  }
  0x11   :  { %32 = dma.hbm_to_vmem [thread:$0]  %s1855_s1, 16384, %s27_s16, [#allocation5], %s1748_s25, %s1748_s25, %s1749_s26  }
  0x12   :  { %s1750_s29 = smov [#allocation2]   ;;  %s1751_s5 = smov [#allocation6]  }
  0x13   :  { %s17_s30 = sshll.u32 %s1750_s29, 4  ;;  %s38_s6 = sshll.u32 %s1751_s5, 4  ;;  %s18_s30 = int_to_ptr.vmem [resolvable:$true] %s17_s30  ;;  %s39_s6 = int_to_ptr.vmem [resolvable:$true] %s38_s6 }
  0x14   :  { %s1699_s9 = scalar_lea.hbm %s1854_s0, 256 }
  0x15   :  { %p1700_p8 = scmp.ne.s32.totalorder %s1854_s0, %s1699_s9  ;;  %p1703_p9 = scmp.lt.u32.totalorder %s1699_s9, %s1854_s0 }
  0x17   :  { %p1705_p10 = pnand %p1703_p9, %p1700_p8 }
  0x19   :  { %1708 = shalt.err (!%p1705_p10)
}
  0x1a   :  { %s1709_s1 = scalar_lea.vmem %s18_s30, 256  ;;  %p1714_p12 = scmp.lt.s32.totalorder %s18_s30, %s18_s30 }
  0x1b   :  { %p1710_p11 = scmp.ne.s32.totalorder %s18_s30, %s1709_s1  ;;  %p1715_p13 = scmp.lt.s32.totalorder %s1709_s1, %s1709_s1 }
  0x1d   :  { %p1716_p0 = por %p1715_p13, %p1714_p12 }
  0x1f   :  { %p1717_p1 = pnand %p1716_p0, %p1710_p11 }
  0x21   :  { %1720 = shalt.err (!%p1717_p1)
}
  0x22   :  { %20 = dma.hbm_to_vmem [thread:$0]  %s1854_s0, 256, %s18_s30, [#allocation3]  }
  0x23   :  { %s1721_s18 = scalar_lea.hbm %s1856_s2, 2048 }
  0x24   :  { %p1722_p2 = scmp.ne.s32.totalorder %s1856_s2, %s1721_s18  ;;  %p1725_p3 = scmp.lt.u32.totalorder %s1721_s18, %s1856_s2 }
  0x26   :  { %p1727_p4 = pnand %p1725_p3, %p1722_p2 }
  0x28   :  { %1730 = shalt.err (!%p1727_p4)
}
  0x29   :  { %s1731_s23 = scalar_lea.vmem %s39_s6, 2048  ;;  %p1736_p6 = scmp.lt.s32.totalorder %s39_s6, %s39_s6 }
  0x2a   :  { %p1732_p5 = scmp.ne.s32.totalorder %s39_s6, %s1731_s23  ;;  %p1737_p7 = scmp.lt.s32.totalorder %s1731_s23, %s1731_s23 }
  0x2c   :  { %p1738_p8 = por %p1737_p7, %p1736_p6 }
  0x2e   :  { %p1739_p9 = pnand %p1738_p8, %p1732_p5 }
  0x30   :  { %1742 = shalt.err (!%p1739_p9)
}
  0x31   :  { %s1752_s0 = smov 64   ;;  %s1753_s24 = smov 4  }
  0x32   :  { %44 = dma.hbm_to_vmem [thread:$0]  %s1856_s2, 2048, %s39_s6, [#allocation5], %s1752_s0, %s1752_s0, %s1753_s24  }
  0x33   :  { %1743 = dma.done.wait [#allocation3], 256  }
  0x34   :  { %1744 = vsyncadd [#allocation3], 4294967040 }
  0x35   :  { %1745 = dma.done.wait [#allocation5], 18432  }
  0x36   :  { %1746 = vsyncadd [#allocation5], 4294948864  ;;  %v1463_v0 = vld [vmem:[#allocation4 + $0x4] ss:$8 sps:$4 sm:$0xff]   ;;  %v1467_v2 = vld [vmem:[#allocation4] ss:$8 sps:$4 sm:$0xff]   ;;  %v65_v38 = vlaneseq }
  0x37   :  { %v1465_v1 = vld [vmem:[#allocation4 + $0x204] ss:$8 sps:$4 sm:$0xff]   ;;  %894 = vmatprep.subr.bf16.mxu1 %v1463_v0  ;;  %v1468_v3 = vld [vmem:[#allocation4 + $0x200] ss:$8 sps:$4 sm:$0xff]   ;;  %v1469_v4 = vld [vmem:[#allocation4 + $0x14] ss:$8 sps:$4 sm:$0xff]  }
  0x38   :  { %976 = vmatprep.subr.bf16.mxu0 %v1465_v1  ;;  %895 = vmatpush1.bf16.msra.mxu1 %v1467_v2  ;;  %v1471_v5 = vld [vmem:[#allocation4 + $0x214] ss:$8 sps:$4 sm:$0xff]   ;;  %v1473_v6 = vld [vmem:[#allocation4 + $0x10] ss:$8 sps:$4 sm:$0xff]   ;;  %v1475_v8 = vld [vmem:[#allocation4 + $0x24] ss:$8 sps:$4 sm:$0xff]  }
  0x39   :  { %977 = vmatpush1.bf16.msra.mxu0 %v1468_v3  ;;  %896 = vmatprep.subr.bf16.mxu1 %v1469_v4  ;;  %v1474_v7 = vld [vmem:[#allocation4 + $0x210] ss:$8 sps:$4 sm:$0xff]   ;;  %v1477_v9 = vld [vmem:[#allocation4 + $0x224] ss:$8 sps:$4 sm:$0xff]   ;;  %v1479_v10 = vld [vmem:[#allocation4 + $0x20] ss:$8 sps:$4 sm:$0xff]  }
  0x3a   :  { %978 = vmatprep.subr.bf16.mxu0 %v1471_v5  ;;  %v1480_v11 = vld [vmem:[#allocation4 + $0x220] ss:$8 sps:$4 sm:$0xff]   ;;  %v1481_v12 = vld [vmem:[#allocation4 + $0x34] ss:$8 sps:$4 sm:$0xff]   ;;  %v1485_v14 = vld [vmem:[#allocation4 + $0x30] ss:$8 sps:$4 sm:$0xff]  }
  0x3b   :  { %v1483_v13 = vld [vmem:[#allocation4 + $0x234] ss:$8 sps:$4 sm:$0xff]   ;;  %v1486_v15 = vld [vmem:[#allocation4 + $0x230] ss:$8 sps:$4 sm:$0xff]   ;;  %v1487_v16 = vld [vmem:[#allocation4 + $0x44] ss:$8 sps:$4 sm:$0xff]  }
  0x3c   :  { %897 = vmatpush1.bf16.msra.mxu1 %v1473_v6  ;;  %v1489_v17 = vld [vmem:[#allocation4 + $0x244] ss:$8 sps:$4 sm:$0xff]   ;;  %v1491_v18 = vld [vmem:[#allocation4 + $0x40] ss:$8 sps:$4 sm:$0xff]   ;;  %v1493_v20 = vld [vmem:[#allocation4 + $0x54] ss:$8 sps:$4 sm:$0xff]  }
  0x3d   :  { %979 = vmatpush1.bf16.msra.mxu0 %v1474_v7  ;;  %898 = vmatprep.subr.bf16.mxu1 %v1475_v8  ;;  %v1492_v19 = vld [vmem:[#allocation4 + $0x240] ss:$8 sps:$4 sm:$0xff]   ;;  %v1495_v21 = vld [vmem:[#allocation4 + $0x254] ss:$8 sps:$4 sm:$0xff]   ;;  %v1497_v22 = vld [vmem:[#allocation4 + $0x50] ss:$8 sps:$4 sm:$0xff]  }
  0x3e   :  { %980 = vmatprep.subr.bf16.mxu0 %v1477_v9  ;;  %v1498_v23 = vld [vmem:[#allocation4 + $0x250] ss:$8 sps:$4 sm:$0xff]   ;;  %v1499_v24 = vld [vmem:[#allocation4 + $0x64] ss:$8 sps:$4 sm:$0xff]   ;;  %v1503_v26 = vld [vmem:[#allocation4 + $0x60] ss:$8 sps:$4 sm:$0xff]  }
  0x3f   :  { %v1501_v25 = vld [vmem:[#allocation4 + $0x264] ss:$8 sps:$4 sm:$0xff]   ;;  %v1504_v27 = vld [vmem:[#allocation4 + $0x260] ss:$8 sps:$4 sm:$0xff]   ;;  %v1505_v28 = vld [vmem:[#allocation4 + $0x74] ss:$8 sps:$4 sm:$0xff]  }
  0x40   :  { %899 = vmatpush1.bf16.msra.mxu1 %v1479_v10  ;;  %v1507_v29 = vld [vmem:[#allocation4 + $0x274] ss:$8 sps:$4 sm:$0xff]   ;;  %v1509_v30 = vld [vmem:[#allocation4 + $0x70] ss:$8 sps:$4 sm:$0xff]   ;;  %v1511_v32 = vld [vmem:[#allocation4 + $0x84] ss:$8 sps:$4 sm:$0xff]  }
  0x41   :  { %981 = vmatpush1.bf16.msra.mxu0 %v1480_v11  ;;  %900 = vmatprep.subr.bf16.mxu1 %v1481_v12  ;;  %v1510_v31 = vld [vmem:[#allocation4 + $0x270] ss:$8 sps:$4 sm:$0xff]   ;;  %v1513_v33 = vld [vmem:[#allocation4 + $0x284] ss:$8 sps:$4 sm:$0xff]   ;;  %v1515_v34 = vld [vmem:[#allocation4 + $0x80] ss:$8 sps:$4 sm:$0xff]  }
  0x42   :  { %982 = vmatprep.subr.bf16.mxu0 %v1483_v13  ;;  %v1516_v35 = vld [vmem:[#allocation4 + $0x280] ss:$8 sps:$4 sm:$0xff]   ;;  %v1754_v36 = vmov 1983009808   ;;  %v1517_v39 = vld [vmem:[#allocation4 + $0x94] ss:$8 sps:$4 sm:$0xff]  }
  0x43   :  { %v63_v37 = vunpack.c.l.s4 %v1754_v36  ;;  %v1519_v40 = vld [vmem:[#allocation4 + $0x294] ss:$8 sps:$4 sm:$0xff]   ;;  %v1521_v41 = vld [vmem:[#allocation4 + $0x90] ss:$8 sps:$4 sm:$0xff]   ;;  %v1816_v43 = vshrl.u32 %v65_v38, 7  ;;  %vm1250_vm3 = vcmask 1041408  }
  0x44   :  { %901 = vmatpush1.bf16.msra.mxu1 %v1485_v14  ;;  %v1522_v44 = vld [vmem:[#allocation4 + $0x290] ss:$8 sps:$4 sm:$0xff]   ;;  %v1523_v45 = vld [vmem:[#allocation4 + $0xa4] ss:$8 sps:$4 sm:$0xff]   ;;  %v1527_v47 = vld [vmem:[#allocation4 + $0xa0] ss:$8 sps:$4 sm:$0xff]  }
  0x45   :  { %983 = vmatpush1.bf16.msra.mxu0 %v1486_v15  ;;  %902 = vmatprep.subr.bf16.mxu1 %v1487_v16  ;;  %v64_v42 = vunpack.c.0.s8 %v63_v37  ;;  %v1525_v46 = vld [vmem:[#allocation4 + $0x2a4] ss:$8 sps:$4 sm:$0xff]   ;;  %v1528_v48 = vld [vmem:[#allocation4 + $0x2a0] ss:$8 sps:$4 sm:$0xff]   ;;  %v1529_v50 = vld [vmem:[#allocation4 + $0xb4] ss:$8 sps:$4 sm:$0xff]  }
  0x46   :  { %984 = vmatprep.subr.bf16.mxu0 %v1489_v17  ;;  %v1531_v51 = vld [vmem:[#allocation4 + $0x2b4] ss:$8 sps:$4 sm:$0xff]   ;;  %v1533_v53 = vld [vmem:[#allocation4 + $0xb0] ss:$8 sps:$4 sm:$0xff]   ;;  %v1535_v57 = vld [vmem:[#allocation4 + $0xc4] ss:$8 sps:$4 sm:$0xff]  }
  0x47   :  { %v67_v49 = vsub.s32 %v64_v42, %v1816_v43  ;;  %v57_v52 = vld [vmem:[#allocation2] sm:$0xff]  ;;  %v58_v56 = vld [vmem:[#allocation2 + $0x8] sm:$0xff]  ;;  %v1537_v58 = vld [vmem:[#allocation4 + $0x2c4] ss:$8 sps:$4 sm:$0xff]   ;;  %vm1266_vm4 = vcmask 1024  }
  0x48   :  { %903 = vmatpush1.bf16.msra.mxu1 %v1491_v18  ;;  %v1534_v55 = vld [vmem:[#allocation4 + $0x2b0] ss:$8 sps:$4 sm:$0xff]   ;;  %v1539_v63 = vld [vmem:[#allocation4 + $0xc0] ss:$8 sps:$4 sm:$0xff]   ;;  %v1541_v1 = vld [vmem:[#allocation4 + $0xd4] ss:$8 sps:$4 sm:$0xff]   ;;  %v61_v8 = vcombine.high %v57_v52, %v57_v52  ;;  %v78_v9 = vcombine.high %v58_v56, %v58_v56 }
  0x49   :  { %985 = vmatpush1.bf16.msra.mxu0 %v1492_v19  ;;  %904 = vmatprep.subr.bf16.mxu1 %v1493_v20  ;;  %v1819_v54 = vrot.slane %v57_v52, %v67_v49  ;;  %v85_v60 = vrot.slane %v58_v56, %v67_v49  ;;  %v1540_v0 = vld [vmem:[#allocation4 + $0x2c0] ss:$8 sps:$4 sm:$0xff]   ;;  %v1543_v2 = vld [vmem:[#allocation4 + $0x2d4] ss:$8 sps:$4 sm:$0xff]   ;;  %v1545_v4 = vld [vmem:[#allocation4 + $0xd0] ss:$8 sps:$4 sm:$0xff]  }
  0x4a   :  { %986 = vmatprep.subr.bf16.mxu0 %v1495_v21  ;;  %v1546_v5 = vld [vmem:[#allocation4 + $0x2d0] ss:$8 sps:$4 sm:$0xff]   ;;  %v1547_v6 = vld [vmem:[#allocation4 + $0xe4] ss:$8 sps:$4 sm:$0xff]   ;;  %v1551_v10 = vld [vmem:[#allocation4 + $0xe0] ss:$8 sps:$4 sm:$0xff]   ;;  %v1823_v14 = vrot.slane %v61_v8, %v67_v49  ;;  %v1825_v15 = vrot.slane %v78_v9, %v67_v49 }
  0x4b   :  { %v76_v59 = vcombine.high %v1819_v54, %v1819_v54  ;;  %v93_v62 = vcombine.high %v85_v60, %v85_v60  ;;  %v1549_v7 = vld [vmem:[#allocation4 + $0x2e4] ss:$8 sps:$4 sm:$0xff]   ;;  %v1552_v11 = vld [vmem:[#allocation4 + $0x2e0] ss:$8 sps:$4 sm:$0xff]   ;;  %v1553_v12 = vld [vmem:[#allocation4 + $0xf4] ss:$8 sps:$4 sm:$0xff]  }
  0x4c   :  { %905 = vmatpush1.bf16.msra.mxu1 %v1497_v22  ;;  %v1555_v13 = vld [vmem:[#allocation4 + $0x2f4] ss:$8 sps:$4 sm:$0xff]   ;;  %v1557_v16 = vld [vmem:[#allocation4 + $0xf0] ss:$8 sps:$4 sm:$0xff]   ;;  %v1562_v18 = vld [vmem:[#allocation4 + $0x104] ss:$8 sps:$4 sm:$0xff]   ;;  %v77_v20 = vcombine.high %v1823_v14, %v1823_v14  ;;  %v94_v21 = vcombine.high %v1825_v15, %v1825_v15  ;;  %v103_v22 = vpack.c.bf16 %v1819_v54, %v1819_v54 }
  0x4d   :  { %987 = vmatpush1.bf16.msra.mxu0 %v1498_v23  ;;  %906 = vmatprep.subr.bf16.mxu1 %v1499_v24  ;;  %v104_v61 = vpack.c.bf16 %v76_v59, %v76_v59  ;;  %v108_v3 = vpack.c.bf16 %v93_v62, %v93_v62  ;;  %v1558_v17 = vld [vmem:[#allocation4 + $0x2f0] ss:$8 sps:$4 sm:$0xff]   ;;  %v1566_v19 = vld [vmem:[#allocation4 + $0x304] ss:$8 sps:$4 sm:$0xff]   ;;  %v107_v23 = vpack.c.bf16 %v85_v60, %v85_v60  ;;  %v1560_v24 = vld [vmem:[#allocation4 + $0x100] ss:$8 sps:$4 sm:$0xff]  }
  0x4e   :  { %988 = vmatprep.subr.bf16.mxu0 %v1501_v25  ;;  %v1564_v25 = vld [vmem:[#allocation4 + $0x300] ss:$8 sps:$4 sm:$0xff]   ;;  %v1581_v36 = vld [vmem:[#allocation4 + $0x134] ss:$8 sps:$4 sm:$0xff]   ;;  %v1579_v38 = vld [vmem:[#allocation4 + $0x130] ss:$8 sps:$4 sm:$0xff]  }
  0x4f   :  { %926 = vmatprep.mubr.bf16.mxu1 %v104_v61  ;;  %1008 = vmatprep.mubr.bf16.mxu0 %v108_v3  ;;  %v1584_v37 = vld [vmem:[#allocation4 + $0x334] ss:$8 sps:$4 sm:$0xff]   ;;  %v1585_v42 = vld [vmem:[#allocation4 + $0x140] ss:$8 sps:$4 sm:$0xff]   ;;  %v1599_v49 = vld [vmem:[#allocation4 + $0x164] ss:$8 sps:$4 sm:$0xff]  }
  0x50   :  { %907 = vmatpush1.bf16.msra.mxu1 %v1503_v26  ;;  %v1569_v26 = vld [vmem:[#allocation4 + $0x114] ss:$8 sps:$4 sm:$0xff]   ;;  %v1600_v52 = vld [vmem:[#allocation4 + $0x360] ss:$8 sps:$4 sm:$0xff]   ;;  %v1606_v56 = vld [vmem:[#allocation4 + $0x370] ss:$8 sps:$4 sm:$0xff]  }
  0x51   :  { %989 = vmatpush1.bf16.msra.mxu0 %v1504_v27  ;;  %908 = vmatprep.subr.bf16.mxu1 %v1505_v28  ;;  %v1572_v27 = vld [vmem:[#allocation4 + $0x314] ss:$8 sps:$4 sm:$0xff]   ;;  %v106_v28 = vpack.c.bf16 %v77_v20, %v77_v20  ;;  %v1609_v59 = vld [vmem:[#allocation4 + $0x180] ss:$8 sps:$4 sm:$0xff]   ;;  %v1630_v8 = vld [vmem:[#allocation4 + $0x3b0] ss:$8 sps:$4 sm:$0xff]  }
  0x52   :  { %990 = vmatprep.subr.bf16.mxu0 %v1507_v29  ;;  %v110_v29 = vpack.c.bf16 %v94_v21, %v94_v21  ;;  %v1608_v54 = vld [vmem:[#allocation4 + $0x374] ss:$8 sps:$4 sm:$0xff]   ;;  %v1612_v60 = vld [vmem:[#allocation4 + $0x380] ss:$8 sps:$4 sm:$0xff]   ;;  %v1635_v9 = vld [vmem:[#allocation4 + $0x1c4] ss:$8 sps:$4 sm:$0xff]  }
  0x53   :  { %v1617_v61 = vld [vmem:[#allocation4 + $0x194] ss:$8 sps:$4 sm:$0xff]   ;;  %v1621_v3 = vld [vmem:[#allocation4 + $0x1a0] ss:$8 sps:$4 sm:$0xff]   ;;  %v1650_v20 = vld [vmem:[#allocation4 + $0x3e4] ss:$8 sps:$4 sm:$0xff]  }
  0x54   :  { %909 = vmatpush1.bf16.msra.mxu1 %v1509_v30  ;;  %v1567_v30 = vld [vmem:[#allocation4 + $0x110] ss:$8 sps:$4 sm:$0xff]   ;;  %v1620_v62 = vld [vmem:[#allocation4 + $0x394] ss:$8 sps:$4 sm:$0xff]   ;;  %v1645_v21 = vld [vmem:[#allocation4 + $0x1e0] ss:$8 sps:$4 sm:$0xff]  }
  0x55   :  { %991 = vmatpush1.bf16.msra.mxu0 %v1510_v31  ;;  %910 = vmatprep.subr.bf16.mxu1 %v1511_v32  ;;  %v1570_v31 = vld [vmem:[#allocation4 + $0x310] ss:$8 sps:$4 sm:$0xff]   ;;  %v1575_v32 = vld [vmem:[#allocation4 + $0x124] ss:$8 sps:$4 sm:$0xff]  }
  0x56   :  { %992 = vmatprep.subr.bf16.mxu0 %v1513_v33  ;;  %v1578_v33 = vld [vmem:[#allocation4 + $0x324] ss:$8 sps:$4 sm:$0xff]  }
  0x58   :  { %911 = vmatpush1.bf16.msra.mxu1 %v1515_v34  ;;  %v1573_v34 = vld [vmem:[#allocation4 + $0x120] ss:$8 sps:$4 sm:$0xff]  }
  0x59   :  { %993 = vmatpush1.bf16.msra.mxu0 %v1516_v35  ;;  %912 = vmatprep.subr.bf16.mxu1 %v1517_v39  ;;  %v1576_v35 = vld [vmem:[#allocation4 + $0x320] ss:$8 sps:$4 sm:$0xff]   ;;  %v1582_v39 = vld [vmem:[#allocation4 + $0x330] ss:$8 sps:$4 sm:$0xff]  }
  0x5a   :  { %994 = vmatprep.subr.bf16.mxu0 %v1519_v40  ;;  %v1587_v40 = vld [vmem:[#allocation4 + $0x144] ss:$8 sps:$4 sm:$0xff]  }
  0x5c   :  { %913 = vmatpush1.bf16.msra.mxu1 %v1521_v41  ;;  %v1590_v41 = vld [vmem:[#allocation4 + $0x344] ss:$8 sps:$4 sm:$0xff]  }
  0x5d   :  { %995 = vmatpush1.bf16.msra.mxu0 %v1522_v44  ;;  %914 = vmatprep.subr.bf16.mxu1 %v1523_v45  ;;  %v1588_v44 = vld [vmem:[#allocation4 + $0x340] ss:$8 sps:$4 sm:$0xff]   ;;  %v1593_v45 = vld [vmem:[#allocation4 + $0x154] ss:$8 sps:$4 sm:$0xff]  }
  0x5e   :  { %996 = vmatprep.subr.bf16.mxu0 %v1525_v46  ;;  %v1596_v46 = vld [vmem:[#allocation4 + $0x354] ss:$8 sps:$4 sm:$0xff]  }
  0x60   :  { %915 = vmatpush1.bf16.msra.mxu1 %v1527_v47  ;;  %v1591_v47 = vld [vmem:[#allocation4 + $0x150] ss:$8 sps:$4 sm:$0xff]  }
  0x61   :  { %997 = vmatpush1.bf16.msra.mxu0 %v1528_v48  ;;  %916 = vmatprep.subr.bf16.mxu1 %v1529_v50  ;;  %v1594_v48 = vld [vmem:[#allocation4 + $0x350] ss:$8 sps:$4 sm:$0xff]   ;;  %v1602_v50 = vld [vmem:[#allocation4 + $0x364] ss:$8 sps:$4 sm:$0xff]  }
  0x62   :  { %998 = vmatprep.subr.bf16.mxu0 %v1531_v51  ;;  %v1597_v51 = vld [vmem:[#allocation4 + $0x160] ss:$8 sps:$4 sm:$0xff]  }
  0x64   :  { %917 = vmatpush1.bf16.msra.mxu1 %v1533_v53  ;;  %v1605_v53 = vld [vmem:[#allocation4 + $0x174] ss:$8 sps:$4 sm:$0xff]  }
  0x65   :  { %999 = vmatpush1.bf16.msra.mxu0 %v1534_v55  ;;  %918 = vmatprep.subr.bf16.mxu1 %v1535_v57  ;;  %v1603_v55 = vld [vmem:[#allocation4 + $0x170] ss:$8 sps:$4 sm:$0xff]   ;;  %v1611_v57 = vld [vmem:[#allocation4 + $0x184] ss:$8 sps:$4 sm:$0xff]  }
  0x66   :  { %1000 = vmatprep.subr.bf16.mxu0 %v1537_v58  ;;  %v1614_v58 = vld [vmem:[#allocation4 + $0x384] ss:$8 sps:$4 sm:$0xff]  }
  0x68   :  { %919 = vmatpush1.bf16.msra.mxu1 %v1539_v63  ;;  %v1615_v63 = vld [vmem:[#allocation4 + $0x190] ss:$8 sps:$4 sm:$0xff]  }
  0x69   :  { %1001 = vmatpush1.bf16.msra.mxu0 %v1540_v0  ;;  %920 = vmatprep.subr.bf16.mxu1 %v1541_v1  ;;  %v1618_v0 = vld [vmem:[#allocation4 + $0x390] ss:$8 sps:$4 sm:$0xff]   ;;  %v1623_v1 = vld [vmem:[#allocation4 + $0x1a4] ss:$8 sps:$4 sm:$0xff]  }
  0x6a   :  { %1002 = vmatprep.subr.bf16.mxu0 %v1543_v2  ;;  %v1626_v2 = vld [vmem:[#allocation4 + $0x3a4] ss:$8 sps:$4 sm:$0xff]  }
  0x6c   :  { %921 = vmatpush1.bf16.msra.mxu1 %v1545_v4  ;;  %v1624_v4 = vld [vmem:[#allocation4 + $0x3a0] ss:$8 sps:$4 sm:$0xff]  }
  0x6d   :  { %1003 = vmatpush1.bf16.msra.mxu0 %v1546_v5  ;;  %922 = vmatprep.subr.bf16.mxu1 %v1547_v6  ;;  %v1629_v5 = vld [vmem:[#allocation4 + $0x1b4] ss:$8 sps:$4 sm:$0xff]  }
  0x6e   :  { %1004 = vmatprep.subr.bf16.mxu0 %v1549_v7  ;;  %v1632_v6 = vld [vmem:[#allocation4 + $0x3b4] ss:$8 sps:$4 sm:$0xff]   ;;  %v1627_v7 = vld [vmem:[#allocation4 + $0x1b0] ss:$8 sps:$4 sm:$0xff]  }
  0x70   :  { %923 = vmatpush1.bf16.msra.mxu1 %v1551_v10  ;;  %v1638_v10 = vld [vmem:[#allocation4 + $0x3c4] ss:$8 sps:$4 sm:$0xff]  }
  0x71   :  { %1005 = vmatpush1.bf16.msra.mxu0 %v1552_v11  ;;  %924 = vmatprep.subr.bf16.mxu1 %v1553_v12  ;;  %v1633_v11 = vld [vmem:[#allocation4 + $0x1c0] ss:$8 sps:$4 sm:$0xff]  }
  0x72   :  { %1006 = vmatprep.subr.bf16.mxu0 %v1555_v13  ;;  %v1636_v12 = vld [vmem:[#allocation4 + $0x3c0] ss:$8 sps:$4 sm:$0xff]   ;;  %v1641_v13 = vld [vmem:[#allocation4 + $0x1d4] ss:$8 sps:$4 sm:$0xff]  }
  0x74   :  { %925 = vmatpush1.bf16.msra.mxu1 %v1557_v16  ;;  %v1644_v16 = vld [vmem:[#allocation4 + $0x3d4] ss:$8 sps:$4 sm:$0xff]  }
  0x75   :  { %1007 = vmatpush1.bf16.msra.mxu0 %v1558_v17  ;;  %935 = vmatprep.subr.bf16.mxu1 %v1562_v18  ;;  %v1639_v17 = vld [vmem:[#allocation4 + $0x1d0] ss:$8 sps:$4 sm:$0xff]  }
  0x76   :  { %1017 = vmatprep.subr.bf16.mxu0 %v1566_v19  ;;  %v1642_v18 = vld [vmem:[#allocation4 + $0x3d0] ss:$8 sps:$4 sm:$0xff]   ;;  %v1647_v19 = vld [vmem:[#allocation4 + $0x1e4] ss:$8 sps:$4 sm:$0xff]  }
  0x77   :  { %927 = vmatmul.mubr.bf16.vlgmr.msra.gmra.mrb[0].mxu1 %v103_v22  ;;  %v1648_v22 = vld [vmem:[#allocation4 + $0x3e0] ss:$8 sps:$4 sm:$0xff]  }
  0x78   :  { %1009 = vmatmul.mubr.bf16.vlgmr.msra.gmra.mrb[0].mxu0 %v107_v23  ;;  %936 = vmatpush1.bf16.msra.mxu1 %v1560_v24  ;;  %v1653_v23 = vld [vmem:[#allocation4 + $0x1f4] ss:$8 sps:$4 sm:$0xff]  }
  0x79   :  { %1018 = vmatpush1.bf16.msra.mxu0 %v1564_v25  ;;  %937 = vmatprep.subr.bf16.mxu1 %v1569_v26  ;;  %v1656_v24 = vld [vmem:[#allocation4 + $0x3f4] ss:$8 sps:$4 sm:$0xff]   ;;  %v1651_v25 = vld [vmem:[#allocation4 + $0x1f0] ss:$8 sps:$4 sm:$0xff]  }
  0x7a   :  { %1019 = vmatprep.subr.bf16.mxu0 %v1572_v27  ;;  %967 = vmatprep.mubr.bf16.mxu1 %v106_v28  ;;  %v1654_v26 = vld [vmem:[#allocation4 + $0x3f0] ss:$8 sps:$4 sm:$0xff]   ;;  %v1657_v27 = vld [vmem:[#allocation6 + $0x40] sm:$0xff]   ;;  %v105_v28 = vpack.c.bf16 %v1823_v14, %v1823_v14 }
  0x7b   :  { %1049 = vmatprep.mubr.bf16.mxu0 %v110_v29  ;;  %v109_v29 = vpack.c.bf16 %v1825_v15, %v1825_v15  ;;  %v1664_v14 = vld [vmem:[#allocation6 + $0x18] sm:$0xff]   ;;  %v1666_v15 = vld [vmem:[#allocation6 + $0x20] sm:$0xff]  }
  0x7c   :  { %938 = vmatpush1.bf16.msra.mxu1 %v1567_v30  ;;  %v1658_v30 = vld [vmem:[#allocation6] sm:$0xff]  }
  0x7d   :  { %1020 = vmatpush1.bf16.msra.mxu0 %v1570_v31  ;;  %939 = vmatprep.subr.bf16.mxu1 %v1575_v32  ;;  %v1659_v31 = vld [vmem:[#allocation6 + $0x48] sm:$0xff]  }
  0x7e   :  { %1021 = vmatprep.subr.bf16.mxu0 %v1578_v33  ;;  %v1660_v32 = vld [vmem:[#allocation6 + $0x8] sm:$0xff]   ;;  %v1661_v33 = vld [vmem:[#allocation6 + $0x50] sm:$0xff]  }
  0x80   :  { %940 = vmatpush1.bf16.msra.mxu1 %v1573_v34  ;;  %v1662_v34 = vld [vmem:[#allocation6 + $0x10] sm:$0xff]  }
  0x81   :  { %1022 = vmatpush1.bf16.msra.mxu0 %v1576_v35  ;;  %941 = vmatprep.subr.bf16.mxu1 %v1581_v36  ;;  %v1663_v35 = vld [vmem:[#allocation6 + $0x58] sm:$0xff]   ;;  %v1665_v36 = vld [vmem:[#allocation6 + $0x60] sm:$0xff]  }
  0x82   :  { %1023 = vmatprep.subr.bf16.mxu0 %v1584_v37  ;;  %v1667_v37 = vld [vmem:[#allocation6 + $0x68] sm:$0xff]  }
  0x84   :  { %942 = vmatpush1.bf16.msra.mxu1 %v1579_v38  ;;  %v1668_v38 = vld [vmem:[#allocation6 + $0x28] sm:$0xff]  }
  0x85   :  { %1024 = vmatpush1.bf16.msra.mxu0 %v1582_v39  ;;  %943 = vmatprep.subr.bf16.mxu1 %v1587_v40  ;;  %v1669_v39 = vld [vmem:[#allocation6 + $0x70] sm:$0xff]  }
  0x86   :  { %1025 = vmatprep.subr.bf16.mxu0 %v1590_v41  ;;  %v1670_v40 = vld [vmem:[#allocation6 + $0x30] sm:$0xff]   ;;  %v1671_v41 = vld [vmem:[#allocation6 + $0x78] sm:$0xff]  }
  0x88   :  { %944 = vmatpush1.bf16.msra.mxu1 %v1585_v42  ;;  %v1672_v42 = vld [vmem:[#allocation6 + $0x38] sm:$0xff]  }
  0x89   :  { %1026 = vmatpush1.bf16.msra.mxu0 %v1588_v44  ;;  %945 = vmatprep.subr.bf16.mxu1 %v1593_v45  ;;  %v246_v44 = vsub.s32 0, %v1816_v43  ;;  %v111_v45 = vld [vmem:[%s1857_s3] sm:$0x3] }
  0x8a   :  { %1027 = vmatprep.subr.bf16.mxu0 %v1596_v46  ;;  %v250_v46 = vsub.s32 1, %v1816_v43 }
  0x8c   :  { %946 = vmatpush1.bf16.msra.mxu1 %v1591_v47  ;;  %v247_v47 = vrot.slane %v111_v45, %v246_v44 }
  0x8d   :  { %1028 = vmatpush1.bf16.msra.mxu0 %v1594_v48  ;;  %947 = vmatprep.subr.bf16.mxu1 %v1599_v49  ;;  %v251_v48 = vrot.slane %v111_v45, %v250_v46 }
  0x8e   :  { %1029 = vmatprep.subr.bf16.mxu0 %v1602_v50 }
  0x90   :  { %948 = vmatpush1.bf16.msra.mxu1 %v1597_v51 }
  0x91   :  { %1030 = vmatpush1.bf16.msra.mxu0 %v1600_v52  ;;  %949 = vmatprep.subr.bf16.mxu1 %v1605_v53 }
  0x92   :  { %1031 = vmatprep.subr.bf16.mxu0 %v1608_v54 }
  0x94   :  { %950 = vmatpush1.bf16.msra.mxu1 %v1603_v55 }
  0x95   :  { %1032 = vmatpush1.bf16.msra.mxu0 %v1606_v56  ;;  %951 = vmatprep.subr.bf16.mxu1 %v1611_v57 }
  0x96   :  { %1033 = vmatprep.subr.bf16.mxu0 %v1614_v58 }
  0x98   :  { %952 = vmatpush1.bf16.msra.mxu1 %v1609_v59 }
  0x99   :  { %1034 = vmatpush1.bf16.msra.mxu0 %v1612_v60  ;;  %953 = vmatprep.subr.bf16.mxu1 %v1617_v61 }
  0x9a   :  { %1035 = vmatprep.subr.bf16.mxu0 %v1620_v62 }
  0x9c   :  { %954 = vmatpush1.bf16.msra.mxu1 %v1615_v63 }
  0x9d   :  { %1036 = vmatpush1.bf16.msra.mxu0 %v1618_v0  ;;  %955 = vmatprep.subr.bf16.mxu1 %v1623_v1 }
  0x9e   :  { %1037 = vmatprep.subr.bf16.mxu0 %v1626_v2 }
  0xa0   :  { %956 = vmatpush1.bf16.msra.mxu1 %v1621_v3  ;;  %v1402_v3 = vld [vmem:[%s1857_s3 + $0x2] ss:$0 sm:$0xff] }
  0xa1   :  { %1038 = vmatpush1.bf16.msra.mxu0 %v1624_v4  ;;  %957 = vmatprep.subr.bf16.mxu1 %v1629_v5 }
  0xa2   :  { %1039 = vmatprep.subr.bf16.mxu0 %v1632_v6 }
  0xa4   :  { %958 = vmatpush1.bf16.msra.mxu1 %v1627_v7 }
  0xa5   :  { %1040 = vmatpush1.bf16.msra.mxu0 %v1630_v8  ;;  %959 = vmatprep.subr.bf16.mxu1 %v1635_v9 }
  0xa6   :  { %1041 = vmatprep.subr.bf16.mxu0 %v1638_v10  ;;  %v1419_v10 = vld [vmem:[%s1857_s3 + $0x3] ss:$0 sm:$0xff] }
  0xa8   :  { %960 = vmatpush1.bf16.msra.mxu1 %v1633_v11 }
  0xa9   :  { %1042 = vmatpush1.bf16.msra.mxu0 %v1636_v12  ;;  %961 = vmatprep.subr.bf16.mxu1 %v1641_v13 }
  0xaa   :  { %1043 = vmatprep.subr.bf16.mxu0 %v1644_v16  ;;  %v1420_v16 = vld [vmem:[%s1857_s3 + $0x4] ss:$0 sm:$0xff] }
  0xac   :  { %962 = vmatpush1.bf16.msra.mxu1 %v1639_v17 }
  0xad   :  { %1044 = vmatpush1.bf16.msra.mxu0 %v1642_v18  ;;  %963 = vmatprep.subr.bf16.mxu1 %v1647_v19 }
  0xae   :  { %1045 = vmatprep.subr.bf16.mxu0 %v1650_v20 }
  0xb0   :  { %964 = vmatpush1.bf16.msra.mxu1 %v1645_v21 }
  0xb1   :  { %1046 = vmatpush1.bf16.msra.mxu0 %v1648_v22  ;;  %965 = vmatprep.subr.bf16.mxu1 %v1653_v23 }
  0xb2   :  { %1047 = vmatprep.subr.bf16.mxu0 %v1656_v24 }
  0xb4   :  { %966 = vmatpush1.bf16.msra.mxu1 %v1651_v25 }
  0xb5   :  { %1048 = vmatpush1.bf16.msra.mxu0 %v1654_v26  ;;  %1421 = vmatprep.subr.bf16.mxu1 %v1657_v27 }
  0xb7   :  { %968 = vmatmul.mubr.bf16.vlgmr.msra.gmra.mrb[0].mxu1 %v105_v28 }
  0xb8   :  { %1050 = vmatmul.mubr.bf16.vlgmr.msra.gmra.mrb[0].mxu0 %v109_v29  ;;  %1422 = vmatpush3.bf16.msra.mxu1 %v1658_v30 }
  0xb9   :  { %1423 = vmatprep.subr.bf16.mxu1 %v1659_v31 }
  0xbc   :  { %1424 = vmatpush3.bf16.msra.mxu1 %v1660_v32 }
  0xbd   :  { %1425 = vmatprep.subr.bf16.mxu1 %v1661_v33 }
  0xc0   :  { %1426 = vmatpush3.bf16.msra.mxu1 %v1662_v34 }
  0xc1   :  { %1427 = vmatprep.subr.bf16.mxu1 %v1663_v35 }
  0xc4   :  { %1428 = vmatpush3.bf16.msra.mxu1 %v1664_v14 }
  0xc5   :  { %1429 = vmatprep.subr.bf16.mxu1 %v1665_v36 }
  0xc8   :  { %1430 = vmatpush3.bf16.msra.mxu1 %v1666_v15 }
  0xc9   :  { %1431 = vmatprep.subr.bf16.mxu1 %v1667_v37 }
  0xcc   :  { %1432 = vmatpush3.bf16.msra.mxu1 %v1668_v38 }
  0xcd   :  { %1433 = vmatprep.subr.bf16.mxu1 %v1669_v39 }
  0xd0   :  { %1434 = vmatpush3.bf16.msra.mxu1 %v1670_v40 }
  0xd1   :  { %1435 = vmatprep.subr.bf16.mxu1 %v1671_v41 }
  0xd4   :  { %1436 = vmatpush3.bf16.msra.mxu1 %v1672_v42 }
 0x18a   :  { %v969_v49 = vpop.f32.mrb[0].mxu1 }
 0x18b   :  { %v1051_v50 = vpop.f32.mrb[0].mxu0  ;;  %v1443_v51 = vadd.f32 %v969_v49, %v247_v47  ;;  %v971_v52 = vpop.f32.mrb[1].mxu1 }
 0x18c   :  { %v1053_v53 = vpop.f32.mrb[1].mxu0  ;;  %v1445_v54 = vadd.f32 %v971_v52, %v251_v48  ;;  %v973_v55 = vpop.f32.mrb[2].mxu1 }
 0x18d   :  { %v1055_v56 = vpop.f32.mrb[2].mxu0  ;;  %v1444_v57 = vadd.f32 %v1443_v51, %v1051_v50  ;;  %v974_v58 = vpop.f32.mrb[3].mxu1 }
 0x18e   :  { %v1056_v59 = vpop.f32.mrb[3].mxu0  ;;  %v1446_v60 = vadd.f32 %v1445_v54, %v1053_v53 }
 0x18f   :  { %vm1058_vm0 = vcmp.gt.f32.partialorder %v1444_v57, 0.0  ;;  %v1060_v61 = vmul.f32 0.01, %v1444_v57 }
 0x190   :  { %vm1059_vm1 = vcmp.gt.f32.partialorder %v1446_v60, 0.0  ;;  %v1061_v62 = vmul.f32 0.01, %v1446_v60 }
 0x191   :  { %v1062_v63 = vsel %vm1058_vm0, %v1444_v57, %v1060_v61 }
 0x192   :  { %v1063_v43 = vsel %vm1059_vm1, %v1446_v60, %v1061_v62  ;;  %v1064_v1 = vpack.c.bf16 %v1062_v63, %v1062_v63 }
 0x193   :  { %v1065_v0 = vpack.c.bf16 %v1063_v43, %v1063_v43 }
 0x195   :  { %1232 = vmatprep.mubr.bf16.mxu1 %v1065_v0 }
 0x196   :  { %1233 = vmatmul.mubr.bf16.vlgmr.msra.gmra.mrb[4].mxu1 %v1064_v1 }
 0x269   :  { %v1437_v2 = vpop.f32.mrb[4].mxu1 }
 0x26a   :  { %v1438_v4 = vpop.f32.mrb[5].mxu1 }
 0x26b   :  { %v1439_v5 = vadd.f32 %v1438_v4, %v1437_v2  ;;  %v1440_v6 = vpop.f32.mrb[6].mxu1 }
 0x26c   :  { %v1441_v7 = vpop.f32.mrb[7].mxu1 }
 0x26d   :  { %v1235_v8 = vadd.f32 %v1439_v5, %v1402_v3 }
 0x26f   :  { %v1241_v9 = vmul.f32 0.01, %v1235_v8  ;;  %vm1240_vm2 = vcmp.gt.f32.partialorder %v1235_v8, 0.0 }
 0x271   :  { %v1242_v11 = vsel %vm1240_vm2, %v1235_v8, %v1241_v9 }
 0x272   :  { %v1249_v12 = vmul.f32 %v1419_v10, %v1242_v11 }
 0x274   :  { %v1251_v13 = vsel %vm1250_vm3, %v1249_v12, 0.0 }
 0x275   :  { %1252 = vadd.xlane.f32.xlu0 %v1251_v13 }
 0x302   :  { %v1253_v17 = vpop.xlane.xlu0 %1252 }
 0x303   :  { %v1260_v18 = vadd.f32 %v1420_v16, %v1253_v17 }
 0x305   :  { %v1261_v19 = vsub.f32 0.0, %v1260_v18 }
 0x307   :  { %v1262_v20 = vmul.f32 1.442695, %v1261_v19 }
 0x309   :  { %1673 = vpow2.f32 %v1262_v20 }
 0x313   :  { %v1674_v21 = vpop.eup %1673 }
 0x314   :  { %v1264_v22 = vadd.f32 1.0, %v1674_v21 }
 0x316   :  { %1675 = vrcp.f32 %v1264_v22 }
 0x320   :  { %v1676_v23 = vpop.eup %1675 }
 0x321   :  { %1267 = vst.msk [vmem:[%s1858_s4] sm:$0x3] %vm1266_vm4, %v1676_v23 }
 0x322   :  { %1272 = vsyncpa [#allocation3], 1 }
 0x323   :  { %1273 = vsyncpa [#allocation5], 1 }

</bundles_post_ra>
